<compile_context>
chip_gen: v5e
topology: v5e:2x2
jax: 0.10.0
libtpu: 0.0.40
codegen_flags: <defaults>
</compile_context>

<pallas_src>
import jax
import jax.numpy as jnp
from jax.experimental import pallas as pl
from jax.experimental.pallas import tpu as pltpu

# ---------------------------------------------------------------------------
# Config (small, deterministic)
# ---------------------------------------------------------------------------
B = 2      # batch
S = 8      # src_len
D = 32     # model_size
H = 4      # heads
DK = D // H
F = 64     # feed-forward inner size
EPS = 1e-6
NEG_INF = -1e9


def _layernorm(x, gamma, beta):
    mu = jnp.mean(x, axis=-1, keepdims=True)
    var = jnp.mean((x - mu) * (x - mu), axis=-1, keepdims=True)
    return (x - mu) * jax.lax.rsqrt(var + EPS) * gamma + beta


# ---------------------------------------------------------------------------
# Kernel (parameterized by BB = batch items per grid step)
# ---------------------------------------------------------------------------
def _make_kernel(BB):
    def encoder_layer_kernel(
        lens_ref,                                   # SMEM, scalar-prefetched (B,)
        x_ref,                                      # (BB*S, D) f32
        wqkv_ref, bqkv_ref, wo_ref, bo_ref,         # bf16 / f32 params
        g1_ref, be1_ref, g2_ref, be2_ref,
        w1_ref, bf1_ref, w2_ref, bf2_ref,
        out_ref,
    ):
        x = x_ref[...]                              # (BB*S, D) f32

        # ---- pre-attention LayerNorm (EncoderLayer.layer_norm), f32 ----
        x_ln = _layernorm(x, g1_ref[...], be1_ref[...])

        # ---- fused QKV projection: one (BB*S,D)@(D,3D) bf16 MXU op, f32 acc ----
        qkv = (jnp.dot(x_ln.astype(jnp.bfloat16), wqkv_ref[...],
                       preferred_element_type=jnp.float32)
               + bqkv_ref[...])                     # (BB*S, 3D) f32

        scale = 1.0 / (DK ** 0.5)
        col = jax.lax.broadcasted_iota(jnp.int32, (S, S), 1)

        attn_blocks = []
        for bb in range(BB):                        # static loop over batch items
            b_idx = pl.program_id(0) * BB + bb
            # Padding mask built in-kernel from the prefetched length: no
            # (B,S,S) HBM traffic, hoisted once out of the head loop, f32 bias.
            mask_bias = jnp.where(col < lens_ref[b_idx], 0.0, NEG_INF)  # (S,S)

            r0 = bb * S
            attn_b = jnp.zeros((S, D), jnp.float32)
            for h in range(H):                      # static unroll; static slices
                q = qkv[r0:r0 + S, h * DK:(h + 1) * DK]
                k = qkv[r0:r0 + S, D + h * DK:D + (h + 1) * DK]
                v = qkv[r0:r0 + S, 2 * D + h * DK:2 * D + (h + 1) * DK]
                # scores = q @ k^T / sqrt(dk) (contract dk, no transpose), f32
                s = jax.lax.dot_general(
                    q, k, (((1,), (1,)), ((), ())),
                    preferred_element_type=jnp.float32,
                ) * scale + mask_bias
                # NOTE: a fully-masked row degenerates to uniform attention
                # (all scores -1e9, max-subtract -> 0), same as the reference.
                s = s - jnp.max(s, axis=-1, keepdims=True)
                p = jnp.exp(s)
                p = p * pl.reciprocal(jnp.sum(p, axis=-1, keepdims=True),
                                      approx=True)
                ctx_h = jnp.dot(p.astype(jnp.bfloat16), v.astype(jnp.bfloat16),
                                preferred_element_type=jnp.float32)   # (S, DK)
                # Accumulate the partial output projection instead of
                # lane-concatenating heads: DK-row slice of wo is sublane-aligned.
                attn_b = attn_b + jnp.dot(
                    ctx_h.astype(jnp.bfloat16),
                    wo_ref[h * DK:(h + 1) * DK, :],
                    preferred_element_type=jnp.float32,
                )
            attn_blocks.append(attn_b)

        attn = attn_blocks[0] if BB == 1 else jnp.concatenate(attn_blocks, axis=0)
        attn = attn + bo_ref[...]                   # output bias added once

        # dropout(context) + x  -> dropout is identity in eval mode
        out1 = attn + x

        # ---- PositionwiseFeedForward: w2(relu(w1(LN(out1)))) + out1 ----
        y_ln = _layernorm(out1, g2_ref[...], be2_ref[...])
        inter = jnp.maximum(
            jnp.dot(y_ln.astype(jnp.bfloat16), w1_ref[...],
                    preferred_element_type=jnp.float32) + bf1_ref[...],
            0.0,
        )
        ffn = (jnp.dot(inter.astype(jnp.bfloat16), w2_ref[...],
                       preferred_element_type=jnp.float32) + bf2_ref[...])
        out_ref[...] = (ffn + out1).astype(out_ref.dtype)

    return encoder_layer_kernel


def _auto_batch_per_step(batch):
    """v7x (2 TCs/chip): 1 batch item per grid step so 'parallel' shards across
    TCs.  Single-TC chips (v5e/v6e): fold the whole batch into one step to
    remove the ~0.35 us fixed per-step grid overhead."""
    try:
        kind = jax.devices()[0].device_kind.lower()
    except Exception:
        kind = ""
    if "v7" in kind and batch > 1:
        return 1
    return batch


def encoder_layer(x, lengths, params, *, batch_per_step=None):
    """x: (B, S, D) f32, lengths: (B,) int32 valid lengths -> (B, S, D) f32."""
    Bx, Sx, Dx = x.shape
    BB = _auto_batch_per_step(Bx) if batch_per_step is None else batch_per_step
    assert Bx % BB == 0
    n_steps = Bx // BB

    (wqkv, bqkv, wo, bo, g1, be1, g2, be2, w1, bf1, w2, bf2) = params
    # Cast weight matrices to bf16 wrapper-side (halves weight DMA + VMEM);
    # biases / LayerNorm params stay f32 (added to f32 accumulators).
    wqkv = wqkv.astype(jnp.bfloat16)
    wo = wo.astype(jnp.bfloat16)
    w1 = w1.astype(jnp.bfloat16)
    w2 = w2.astype(jnp.bfloat16)

    x2 = x.reshape(Bx * Sx, Dx)                     # fold batch into sublanes

    full = lambda shape: pl.BlockSpec(shape, lambda i, lens: (0,) * len(shape))
    in_specs = [
        pl.BlockSpec((BB * S, D), lambda i, lens: (i, 0)),   # x slab
        full((D, 3 * D)), full((1, 3 * D)),                  # wqkv (bf16), bqkv
        full((D, D)), full((1, D)),                          # wo (bf16), bo
        full((1, D)), full((1, D)),                          # gamma1, beta1
        full((1, D)), full((1, D)),                          # gamma2, beta2
        full((D, F)), full((1, F)),                          # w1 (bf16), b1
        full((F, D)), full((1, D)),                          # w2 (bf16), b2
    ]

    out = pl.pallas_call(
        _make_kernel(BB),
        out_shape=jax.ShapeDtypeStruct((Bx * Sx, Dx), jnp.float32),
        grid_spec=pltpu.PrefetchScalarGridSpec(
            num_scalar_prefetch=1,                  # lengths -> SMEM
            grid=(n_steps,),
            in_specs=in_specs,
            out_specs=pl.BlockSpec((BB * S, D), lambda i, lens: (i, 0)),
        ),
        compiler_params=pltpu.CompilerParams(dimension_semantics=("parallel",)),
    )(lengths, x2, wqkv, bqkv, wo, bo, g1, be1, g2, be2, w1, bf1, w2, bf2)
    return out.reshape(Bx, Sx, Dx)


# ---------------------------------------------------------------------------
# Pure-JAX f32 reference (module semantics) — standard multi-head attention
# expressed with the same fused parameter layout.
# ---------------------------------------------------------------------------
def encoder_layer_ref(x, lengths, params):
    (wqkv, bqkv, wo, bo, g1, be1, g2, be2, w1, bf1, w2, bf2) = params
    col = jnp.arange(S)
    out = []
    for b in range(B):
        xb = x[b]
        mb = jnp.broadcast_to(col[None, :] < lengths[b], (S, S))
        x_ln = _layernorm(xb, g1, be1)
        qkv = x_ln @ wqkv + bqkv
        q, k, v = qkv[:, :D], qkv[:, D:2 * D], qkv[:, 2 * D:]
        ctxs = []
        for h in range(H):
            qh = q[:, h * DK:(h + 1) * DK]
            kh = k[:, h * DK:(h + 1) * DK]
            vh = v[:, h * DK:(h + 1) * DK]
            sc = (qh @ kh.T) / (DK ** 0.5)
            sc = jnp.where(mb, sc, NEG_INF)
            p = jax.nn.softmax(sc, axis=-1)
            ctxs.append(p @ vh)
        attn = jnp.concatenate(ctxs, axis=-1) @ wo + bo
        out1 = attn + xb
        y_ln = _layernorm(out1, g2, be2)
        ffn = jnp.maximum(y_ln @ w1 + bf1, 0.0) @ w2 + bf2
        out.append(ffn + out1)
    return jnp.stack(out)


def make_params(key):
    ks = jax.random.split(key, 12)
    s = 0.1
    wqkv = s * jax.random.normal(ks[0], (D, 3 * D), jnp.float32)
    bqkv = s * jax.random.normal(ks[1], (1, 3 * D), jnp.float32)
    wo = s * jax.random.normal(ks[2], (D, D), jnp.float32)
    bo = s * jax.random.normal(ks[3], (1, D), jnp.float32)
    g1 = 1.0 + s * jax.random.normal(ks[4], (1, D), jnp.float32)
    be1 = s * jax.random.normal(ks[5], (1, D), jnp.float32)
    g2 = 1.0 + s * jax.random.normal(ks[6], (1, D), jnp.float32)
    be2 = s * jax.random.normal(ks[7], (1, D), jnp.float32)
    w1 = s * jax.random.normal(ks[8], (D, F), jnp.float32)
    bf1 = s * jax.random.normal(ks[9], (1, F), jnp.float32)
    w2 = s * jax.random.normal(ks[10], (F, D), jnp.float32)
    bf2 = s * jax.random.normal(ks[11], (1, D), jnp.float32)
    return (wqkv, bqkv, wo, bo, g1, be1, g2, be2, w1, bf1, w2, bf2)


if __name__ == "__main__":
    key = jax.random.PRNGKey(0)
    kx, kp = jax.random.split(key)
    x = jax.random.normal(kx, (B, S, D), jnp.float32)
    # valid-length padding mask: batch 0 attends to all 8, batch 1 to first 5
    lengths = jnp.array([8, 5], dtype=jnp.int32)
    params = make_params(kp)

    out = encoder_layer(x, lengths, params)
    jax.block_until_ready(out)

    ref = encoder_layer_ref(x, lengths, params)
    assert out.shape == (B, S, D)
    # Tolerance covers bf16 MXU operands (f32 accumulation) and the approx
    # (EUP) reciprocal in the softmax normalizer vs. the full-f32 reference.
    assert jnp.allclose(out, ref, atol=3e-2, rtol=3e-2), "mismatch vs reference"
    print("KERNEL_OK")
</pallas_src>

<mosaic_0001>
module attributes {stable_mosaic.version = 11 : i64} {
  func.func @encoder_layer_kernel(%arg0: i32, %arg1: memref<2xi32, #tpu.memory_space<smem>>, %arg2: memref<16x32xf32, #tpu.memory_space<vmem>>, %arg3: memref<32x96xbf16, #tpu.memory_space<vmem>>, %arg4: memref<1x96xf32, #tpu.memory_space<vmem>>, %arg5: memref<32x32xbf16, #tpu.memory_space<vmem>>, %arg6: memref<1x32xf32, #tpu.memory_space<vmem>>, %arg7: memref<1x32xf32, #tpu.memory_space<vmem>>, %arg8: memref<1x32xf32, #tpu.memory_space<vmem>>, %arg9: memref<1x32xf32, #tpu.memory_space<vmem>>, %arg10: memref<1x32xf32, #tpu.memory_space<vmem>>, %arg11: memref<32x64xbf16, #tpu.memory_space<vmem>>, %arg12: memref<1x64xf32, #tpu.memory_space<vmem>>, %arg13: memref<64x32xbf16, #tpu.memory_space<vmem>>, %arg14: memref<1x32xf32, #tpu.memory_space<vmem>>, %arg15: memref<16x32xf32, #tpu.memory_space<vmem>>) attributes {dimension_semantics = [#tpu.dimension_semantics<parallel>], iteration_bounds = array<i64: 1>, scalar_prefetch = 1 : i64, scratch_operands = 0 : i64, tpu.core_type = #tpu.core_type<tc>, window_params = [{transform_indices = @transform_0, window_bounds = array<i64: 16, 32>}, {pipeline_mode = #tpu.pipeline_mode<synchronous>, transform_indices = @transform_1, window_bounds = array<i64: 32, 96>}, {pipeline_mode = #tpu.pipeline_mode<synchronous>, transform_indices = @transform_2, window_bounds = array<i64: 1, 96>}, {pipeline_mode = #tpu.pipeline_mode<synchronous>, transform_indices = @transform_3, window_bounds = array<i64: 32, 32>}, {pipeline_mode = #tpu.pipeline_mode<synchronous>, transform_indices = @transform_4, window_bounds = array<i64: 1, 32>}, {pipeline_mode = #tpu.pipeline_mode<synchronous>, transform_indices = @transform_5, window_bounds = array<i64: 1, 32>}, {pipeline_mode = #tpu.pipeline_mode<synchronous>, transform_indices = @transform_6, window_bounds = array<i64: 1, 32>}, {pipeline_mode = #tpu.pipeline_mode<synchronous>, transform_indices = @transform_7, window_bounds = array<i64: 1, 32>}, {pipeline_mode = #tpu.pipeline_mode<synchronous>, transform_indices = @transform_8, window_bounds = array<i64: 1, 32>}, {pipeline_mode = #tpu.pipeline_mode<synchronous>, transform_indices = @transform_9, window_bounds = array<i64: 32, 64>}, {pipeline_mode = #tpu.pipeline_mode<synchronous>, transform_indices = @transform_10, window_bounds = array<i64: 1, 64>}, {pipeline_mode = #tpu.pipeline_mode<synchronous>, transform_indices = @transform_11, window_bounds = array<i64: 64, 32>}, {pipeline_mode = #tpu.pipeline_mode<synchronous>, transform_indices = @transform_12, window_bounds = array<i64: 1, 32>}, {transform_indices = @transform_13, window_bounds = array<i64: 16, 32>}]} {
    %c0 = arith.constant 0 : index
    %c0_0 = arith.constant 0 : index
    %0 = vector.load %arg2[%c0, %c0_0] : memref<16x32xf32, #tpu.memory_space<vmem>>, vector<16x32xf32>
    %c0_1 = arith.constant 0 : index
    %c0_2 = arith.constant 0 : index
    %1 = vector.load %arg7[%c0_1, %c0_2] : memref<1x32xf32, #tpu.memory_space<vmem>>, vector<1x32xf32>
    %c0_3 = arith.constant 0 : index
    %c0_4 = arith.constant 0 : index
    %2 = vector.load %arg8[%c0_3, %c0_4] : memref<1x32xf32, #tpu.memory_space<vmem>>, vector<1x32xf32>
    %cst = arith.constant dense<0.000000e+00> : vector<16xf32>
    %3 = vector.multi_reduction <add>, %0, %cst [1] : vector<16x32xf32> to vector<16xf32>
    %4 = vector.shape_cast %3 : vector<16xf32> to vector<16x1xf32>
    %cst_5 = arith.constant 3.200000e+01 : f32
    %5 = vector.broadcast %cst_5 : f32 to vector<16x1xf32>
    %6 = arith.divf %4, %5 : vector<16x1xf32>
    %7 = vector.broadcast %6 : vector<16x1xf32> to vector<16x32xf32>
    %8 = arith.subf %0, %7 : vector<16x32xf32>
    %9 = vector.broadcast %6 : vector<16x1xf32> to vector<16x32xf32>
    %10 = arith.subf %0, %9 : vector<16x32xf32>
    %11 = arith.mulf %8, %10 : vector<16x32xf32>
    %cst_6 = arith.constant dense<0.000000e+00> : vector<16xf32>
    %12 = vector.multi_reduction <add>, %11, %cst_6 [1] : vector<16x32xf32> to vector<16xf32>
    %13 = vector.shape_cast %12 : vector<16xf32> to vector<16x1xf32>
    %cst_7 = arith.constant 3.200000e+01 : f32
    %14 = vector.broadcast %cst_7 : f32 to vector<16x1xf32>
    %15 = arith.divf %13, %14 : vector<16x1xf32>
    %16 = vector.broadcast %6 : vector<16x1xf32> to vector<16x32xf32>
    %17 = arith.subf %0, %16 : vector<16x32xf32>
    %cst_8 = arith.constant 9.99999997E-7 : f32
    %18 = vector.broadcast %cst_8 : f32 to vector<16x1xf32>
    %19 = arith.addf %15, %18 : vector<16x1xf32>
    %20 = math.rsqrt %19 : vector<16x1xf32>
    %21 = vector.broadcast %20 : vector<16x1xf32> to vector<16x32xf32>
    %22 = arith.mulf %17, %21 : vector<16x32xf32>
    %23 = vector.broadcast %1 : vector<1x32xf32> to vector<16x32xf32>
    %24 = arith.mulf %22, %23 : vector<16x32xf32>
    %25 = vector.broadcast %2 : vector<1x32xf32> to vector<16x32xf32>
    %26 = arith.addf %24, %25 : vector<16x32xf32>
    %27 = arith.truncf %26 : vector<16x32xf32> to vector<16x32xbf16>
    %c0_9 = arith.constant 0 : index
    %c0_10 = arith.constant 0 : index
    %28 = vector.load %arg3[%c0_9, %c0_10] : memref<32x96xbf16, #tpu.memory_space<vmem>>, vector<32x96xbf16>
    %cst_11 = arith.constant dense<0.000000e+00> : vector<16x96xf32>
    %29 = tpu.matmul %27, %28, %cst_11 {dimension_numbers = #tpu.dot_dimension_numbers<[1], [0], [0], [1], [0, 0, 1, 1], [], []>} : vector<16x32xbf16>, vector<32x96xbf16>, vector<16x96xf32> -> vector<16x96xf32>
    %c0_12 = arith.constant 0 : index
    %c0_13 = arith.constant 0 : index
    %30 = vector.load %arg4[%c0_12, %c0_13] : memref<1x96xf32, #tpu.memory_space<vmem>>, vector<1x96xf32>
    %31 = vector.broadcast %30 : vector<1x96xf32> to vector<16x96xf32>
    %32 = arith.addf %29, %31 : vector<16x96xf32>
    %33 = tpu.iota {dimensions = array<i32: 1>} : vector<8x8xi32>
    %c2_i32 = arith.constant 2 : i32
    %34 = arith.muli %arg0, %c2_i32 : i32
    %c0_i32 = arith.constant 0 : i32
    %35 = arith.addi %34, %c0_i32 : i32
    %36 = arith.index_cast %35 : i32 to index
    %37 = memref.load %arg1[%36] : memref<2xi32, #tpu.memory_space<smem>>
    %38 = vector.broadcast %37 : i32 to vector<8x8xi32>
    %39 = arith.cmpi slt, %33, %38 : vector<8x8xi32>
    %cst_14 = arith.constant 0.000000e+00 : f32
    %cst_15 = arith.constant -1.000000e+09 : f32
    %40 = vector.broadcast %cst_14 : f32 to vector<8x8xf32>
    %41 = vector.broadcast %cst_15 : f32 to vector<8x8xf32>
    %42 = arith.select %39, %40, %41 : vector<8x8xi1>, vector<8x8xf32>
    %cst_16 = arith.constant 0.000000e+00 : f32
    %43 = vector.broadcast %cst_16 : f32 to vector<8x32xf32>
    %44 = vector.extract_strided_slice %32 {offsets = [0, 0], sizes = [8, 8], strides = [1, 1]} : vector<16x96xf32> to vector<8x8xf32>
    %45 = vector.extract_strided_slice %32 {offsets = [0, 32], sizes = [8, 8], strides = [1, 1]} : vector<16x96xf32> to vector<8x8xf32>
    %46 = vector.extract_strided_slice %32 {offsets = [0, 64], sizes = [8, 8], strides = [1, 1]} : vector<16x96xf32> to vector<8x8xf32>
    %cst_17 = arith.constant dense<0.000000e+00> : vector<8x8xf32>
    %47 = tpu.matmul %44, %45, %cst_17 {dimension_numbers = #tpu.dot_dimension_numbers<[1], [1], [0], [0], [0, 0, 1, 0], [], []>} : vector<8x8xf32>, vector<8x8xf32>, vector<8x8xf32> -> vector<8x8xf32>
    %cst_18 = arith.constant 0.353553385 : f32
    %48 = vector.broadcast %cst_18 : f32 to vector<8x8xf32>
    %49 = arith.mulf %47, %48 : vector<8x8xf32>
    %50 = arith.addf %49, %42 : vector<8x8xf32>
    %cst_19 = arith.constant dense<0xFF800000> : vector<8xf32>
    %51 = vector.multi_reduction <maximumf>, %50, %cst_19 [1] : vector<8x8xf32> to vector<8xf32>
    %52 = vector.shape_cast %51 : vector<8xf32> to vector<8x1xf32>
    %53 = vector.broadcast %52 : vector<8x1xf32> to vector<8x8xf32>
    %54 = arith.subf %50, %53 : vector<8x8xf32>
    %55 = math.exp %54 : vector<8x8xf32>
    %cst_20 = arith.constant dense<0.000000e+00> : vector<8xf32>
    %56 = vector.multi_reduction <add>, %55, %cst_20 [1] : vector<8x8xf32> to vector<8xf32>
    %57 = vector.shape_cast %56 : vector<8xf32> to vector<8x1xf32>
    %58 = tpu.reciprocal %57 {approx = true} : vector<8x1xf32> -> vector<8x1xf32>
    %59 = vector.broadcast %58 : vector<8x1xf32> to vector<8x8xf32>
    %60 = arith.mulf %55, %59 : vector<8x8xf32>
    %61 = arith.truncf %60 : vector<8x8xf32> to vector<8x8xbf16>
    %62 = arith.truncf %46 : vector<8x8xf32> to vector<8x8xbf16>
    %cst_21 = arith.constant dense<0.000000e+00> : vector<8x8xf32>
    %63 = tpu.matmul %61, %62, %cst_21 {dimension_numbers = #tpu.dot_dimension_numbers<[1], [0], [0], [1], [0, 0, 1, 1], [], []>} : vector<8x8xbf16>, vector<8x8xbf16>, vector<8x8xf32> -> vector<8x8xf32>
    %64 = arith.truncf %63 : vector<8x8xf32> to vector<8x8xbf16>
    %c0_22 = arith.constant 0 : index
    %c0_23 = arith.constant 0 : index
    %65 = vector.load %arg5[%c0_22, %c0_23] : memref<32x32xbf16, #tpu.memory_space<vmem>>, vector<8x32xbf16>
    %cst_24 = arith.constant dense<0.000000e+00> : vector<8x32xf32>
    %66 = tpu.matmul %64, %65, %cst_24 {dimension_numbers = #tpu.dot_dimension_numbers<[1], [0], [0], [1], [0, 0, 1, 1], [], []>} : vector<8x8xbf16>, vector<8x32xbf16>, vector<8x32xf32> -> vector<8x32xf32>
    %67 = arith.addf %43, %66 : vector<8x32xf32>
    %68 = vector.extract_strided_slice %32 {offsets = [0, 8], sizes = [8, 8], strides = [1, 1]} : vector<16x96xf32> to vector<8x8xf32>
    %69 = vector.extract_strided_slice %32 {offsets = [0, 40], sizes = [8, 8], strides = [1, 1]} : vector<16x96xf32> to vector<8x8xf32>
    %70 = vector.extract_strided_slice %32 {offsets = [0, 72], sizes = [8, 8], strides = [1, 1]} : vector<16x96xf32> to vector<8x8xf32>
    %cst_25 = arith.constant dense<0.000000e+00> : vector<8x8xf32>
    %71 = tpu.matmul %68, %69, %cst_25 {dimension_numbers = #tpu.dot_dimension_numbers<[1], [1], [0], [0], [0, 0, 1, 0], [], []>} : vector<8x8xf32>, vector<8x8xf32>, vector<8x8xf32> -> vector<8x8xf32>
    %cst_26 = arith.constant 0.353553385 : f32
    %72 = vector.broadcast %cst_26 : f32 to vector<8x8xf32>
    %73 = arith.mulf %71, %72 : vector<8x8xf32>
    %74 = arith.addf %73, %42 : vector<8x8xf32>
    %cst_27 = arith.constant dense<0xFF800000> : vector<8xf32>
    %75 = vector.multi_reduction <maximumf>, %74, %cst_27 [1] : vector<8x8xf32> to vector<8xf32>
    %76 = vector.shape_cast %75 : vector<8xf32> to vector<8x1xf32>
    %77 = vector.broadcast %76 : vector<8x1xf32> to vector<8x8xf32>
    %78 = arith.subf %74, %77 : vector<8x8xf32>
    %79 = math.exp %78 : vector<8x8xf32>
    %cst_28 = arith.constant dense<0.000000e+00> : vector<8xf32>
    %80 = vector.multi_reduction <add>, %79, %cst_28 [1] : vector<8x8xf32> to vector<8xf32>
    %81 = vector.shape_cast %80 : vector<8xf32> to vector<8x1xf32>
    %82 = tpu.reciprocal %81 {approx = true} : vector<8x1xf32> -> vector<8x1xf32>
    %83 = vector.broadcast %82 : vector<8x1xf32> to vector<8x8xf32>
    %84 = arith.mulf %79, %83 : vector<8x8xf32>
    %85 = arith.truncf %84 : vector<8x8xf32> to vector<8x8xbf16>
    %86 = arith.truncf %70 : vector<8x8xf32> to vector<8x8xbf16>
    %cst_29 = arith.constant dense<0.000000e+00> : vector<8x8xf32>
    %87 = tpu.matmul %85, %86, %cst_29 {dimension_numbers = #tpu.dot_dimension_numbers<[1], [0], [0], [1], [0, 0, 1, 1], [], []>} : vector<8x8xbf16>, vector<8x8xbf16>, vector<8x8xf32> -> vector<8x8xf32>
    %88 = arith.truncf %87 : vector<8x8xf32> to vector<8x8xbf16>
    %c8 = arith.constant 8 : index
    %c0_30 = arith.constant 0 : index
    %89 = vector.load %arg5[%c8, %c0_30] : memref<32x32xbf16, #tpu.memory_space<vmem>>, vector<8x32xbf16>
    %cst_31 = arith.constant dense<0.000000e+00> : vector<8x32xf32>
    %90 = tpu.matmul %88, %89, %cst_31 {dimension_numbers = #tpu.dot_dimension_numbers<[1], [0], [0], [1], [0, 0, 1, 1], [], []>} : vector<8x8xbf16>, vector<8x32xbf16>, vector<8x32xf32> -> vector<8x32xf32>
    %91 = arith.addf %67, %90 : vector<8x32xf32>
    %92 = vector.extract_strided_slice %32 {offsets = [0, 16], sizes = [8, 8], strides = [1, 1]} : vector<16x96xf32> to vector<8x8xf32>
    %93 = vector.extract_strided_slice %32 {offsets = [0, 48], sizes = [8, 8], strides = [1, 1]} : vector<16x96xf32> to vector<8x8xf32>
    %94 = vector.extract_strided_slice %32 {offsets = [0, 80], sizes = [8, 8], strides = [1, 1]} : vector<16x96xf32> to vector<8x8xf32>
    %cst_32 = arith.constant dense<0.000000e+00> : vector<8x8xf32>
    %95 = tpu.matmul %92, %93, %cst_32 {dimension_numbers = #tpu.dot_dimension_numbers<[1], [1], [0], [0], [0, 0, 1, 0], [], []>} : vector<8x8xf32>, vector<8x8xf32>, vector<8x8xf32> -> vector<8x8xf32>
    %cst_33 = arith.constant 0.353553385 : f32
    %96 = vector.broadcast %cst_33 : f32 to vector<8x8xf32>
    %97 = arith.mulf %95, %96 : vector<8x8xf32>
    %98 = arith.addf %97, %42 : vector<8x8xf32>
    %cst_34 = arith.constant dense<0xFF800000> : vector<8xf32>
    %99 = vector.multi_reduction <maximumf>, %98, %cst_34 [1] : vector<8x8xf32> to vector<8xf32>
    %100 = vector.shape_cast %99 : vector<8xf32> to vector<8x1xf32>
    %101 = vector.broadcast %100 : vector<8x1xf32> to vector<8x8xf32>
    %102 = arith.subf %98, %101 : vector<8x8xf32>
    %103 = math.exp %102 : vector<8x8xf32>
    %cst_35 = arith.constant dense<0.000000e+00> : vector<8xf32>
    %104 = vector.multi_reduction <add>, %103, %cst_35 [1] : vector<8x8xf32> to vector<8xf32>
    %105 = vector.shape_cast %104 : vector<8xf32> to vector<8x1xf32>
    %106 = tpu.reciprocal %105 {approx = true} : vector<8x1xf32> -> vector<8x1xf32>
    %107 = vector.broadcast %106 : vector<8x1xf32> to vector<8x8xf32>
    %108 = arith.mulf %103, %107 : vector<8x8xf32>
    %109 = arith.truncf %108 : vector<8x8xf32> to vector<8x8xbf16>
    %110 = arith.truncf %94 : vector<8x8xf32> to vector<8x8xbf16>
    %cst_36 = arith.constant dense<0.000000e+00> : vector<8x8xf32>
    %111 = tpu.matmul %109, %110, %cst_36 {dimension_numbers = #tpu.dot_dimension_numbers<[1], [0], [0], [1], [0, 0, 1, 1], [], []>} : vector<8x8xbf16>, vector<8x8xbf16>, vector<8x8xf32> -> vector<8x8xf32>
    %112 = arith.truncf %111 : vector<8x8xf32> to vector<8x8xbf16>
    %c16 = arith.constant 16 : index
    %c0_37 = arith.constant 0 : index
    %113 = vector.load %arg5[%c16, %c0_37] : memref<32x32xbf16, #tpu.memory_space<vmem>>, vector<8x32xbf16>
    %cst_38 = arith.constant dense<0.000000e+00> : vector<8x32xf32>
    %114 = tpu.matmul %112, %113, %cst_38 {dimension_numbers = #tpu.dot_dimension_numbers<[1], [0], [0], [1], [0, 0, 1, 1], [], []>} : vector<8x8xbf16>, vector<8x32xbf16>, vector<8x32xf32> -> vector<8x32xf32>
    %115 = arith.addf %91, %114 : vector<8x32xf32>
    %116 = vector.extract_strided_slice %32 {offsets = [0, 24], sizes = [8, 8], strides = [1, 1]} : vector<16x96xf32> to vector<8x8xf32>
    %117 = vector.extract_strided_slice %32 {offsets = [0, 56], sizes = [8, 8], strides = [1, 1]} : vector<16x96xf32> to vector<8x8xf32>
    %118 = vector.extract_strided_slice %32 {offsets = [0, 88], sizes = [8, 8], strides = [1, 1]} : vector<16x96xf32> to vector<8x8xf32>
    %cst_39 = arith.constant dense<0.000000e+00> : vector<8x8xf32>
    %119 = tpu.matmul %116, %117, %cst_39 {dimension_numbers = #tpu.dot_dimension_numbers<[1], [1], [0], [0], [0, 0, 1, 0], [], []>} : vector<8x8xf32>, vector<8x8xf32>, vector<8x8xf32> -> vector<8x8xf32>
    %cst_40 = arith.constant 0.353553385 : f32
    %120 = vector.broadcast %cst_40 : f32 to vector<8x8xf32>
    %121 = arith.mulf %119, %120 : vector<8x8xf32>
    %122 = arith.addf %121, %42 : vector<8x8xf32>
    %cst_41 = arith.constant dense<0xFF800000> : vector<8xf32>
    %123 = vector.multi_reduction <maximumf>, %122, %cst_41 [1] : vector<8x8xf32> to vector<8xf32>
    %124 = vector.shape_cast %123 : vector<8xf32> to vector<8x1xf32>
    %125 = vector.broadcast %124 : vector<8x1xf32> to vector<8x8xf32>
    %126 = arith.subf %122, %125 : vector<8x8xf32>
    %127 = math.exp %126 : vector<8x8xf32>
    %cst_42 = arith.constant dense<0.000000e+00> : vector<8xf32>
    %128 = vector.multi_reduction <add>, %127, %cst_42 [1] : vector<8x8xf32> to vector<8xf32>
    %129 = vector.shape_cast %128 : vector<8xf32> to vector<8x1xf32>
    %130 = tpu.reciprocal %129 {approx = true} : vector<8x1xf32> -> vector<8x1xf32>
    %131 = vector.broadcast %130 : vector<8x1xf32> to vector<8x8xf32>
    %132 = arith.mulf %127, %131 : vector<8x8xf32>
    %133 = arith.truncf %132 : vector<8x8xf32> to vector<8x8xbf16>
    %134 = arith.truncf %118 : vector<8x8xf32> to vector<8x8xbf16>
    %cst_43 = arith.constant dense<0.000000e+00> : vector<8x8xf32>
    %135 = tpu.matmul %133, %134, %cst_43 {dimension_numbers = #tpu.dot_dimension_numbers<[1], [0], [0], [1], [0, 0, 1, 1], [], []>} : vector<8x8xbf16>, vector<8x8xbf16>, vector<8x8xf32> -> vector<8x8xf32>
    %136 = arith.truncf %135 : vector<8x8xf32> to vector<8x8xbf16>
    %c24 = arith.constant 24 : index
    %c0_44 = arith.constant 0 : index
    %137 = vector.load %arg5[%c24, %c0_44] : memref<32x32xbf16, #tpu.memory_space<vmem>>, vector<8x32xbf16>
    %cst_45 = arith.constant dense<0.000000e+00> : vector<8x32xf32>
    %138 = tpu.matmul %136, %137, %cst_45 {dimension_numbers = #tpu.dot_dimension_numbers<[1], [0], [0], [1], [0, 0, 1, 1], [], []>} : vector<8x8xbf16>, vector<8x32xbf16>, vector<8x32xf32> -> vector<8x32xf32>
    %139 = arith.addf %115, %138 : vector<8x32xf32>
    %c2_i32_46 = arith.constant 2 : i32
    %140 = arith.muli %arg0, %c2_i32_46 : i32
    %c1_i32 = arith.constant 1 : i32
    %141 = arith.addi %140, %c1_i32 : i32
    %142 = arith.index_cast %141 : i32 to index
    %143 = memref.load %arg1[%142] : memref<2xi32, #tpu.memory_space<smem>>
    %144 = vector.broadcast %143 : i32 to vector<8x8xi32>
    %145 = arith.cmpi slt, %33, %144 : vector<8x8xi32>
    %cst_47 = arith.constant 0.000000e+00 : f32
    %cst_48 = arith.constant -1.000000e+09 : f32
    %146 = vector.broadcast %cst_47 : f32 to vector<8x8xf32>
    %147 = vector.broadcast %cst_48 : f32 to vector<8x8xf32>
    %148 = arith.select %145, %146, %147 : vector<8x8xi1>, vector<8x8xf32>
    %cst_49 = arith.constant 0.000000e+00 : f32
    %149 = vector.broadcast %cst_49 : f32 to vector<8x32xf32>
    %150 = vector.extract_strided_slice %32 {offsets = [8, 0], sizes = [8, 8], strides = [1, 1]} : vector<16x96xf32> to vector<8x8xf32>
    %151 = vector.extract_strided_slice %32 {offsets = [8, 32], sizes = [8, 8], strides = [1, 1]} : vector<16x96xf32> to vector<8x8xf32>
    %152 = vector.extract_strided_slice %32 {offsets = [8, 64], sizes = [8, 8], strides = [1, 1]} : vector<16x96xf32> to vector<8x8xf32>
    %cst_50 = arith.constant dense<0.000000e+00> : vector<8x8xf32>
    %153 = tpu.matmul %150, %151, %cst_50 {dimension_numbers = #tpu.dot_dimension_numbers<[1], [1], [0], [0], [0, 0, 1, 0], [], []>} : vector<8x8xf32>, vector<8x8xf32>, vector<8x8xf32> -> vector<8x8xf32>
    %cst_51 = arith.constant 0.353553385 : f32
    %154 = vector.broadcast %cst_51 : f32 to vector<8x8xf32>
    %155 = arith.mulf %153, %154 : vector<8x8xf32>
    %156 = arith.addf %155, %148 : vector<8x8xf32>
    %cst_52 = arith.constant dense<0xFF800000> : vector<8xf32>
    %157 = vector.multi_reduction <maximumf>, %156, %cst_52 [1] : vector<8x8xf32> to vector<8xf32>
    %158 = vector.shape_cast %157 : vector<8xf32> to vector<8x1xf32>
    %159 = vector.broadcast %158 : vector<8x1xf32> to vector<8x8xf32>
    %160 = arith.subf %156, %159 : vector<8x8xf32>
    %161 = math.exp %160 : vector<8x8xf32>
    %cst_53 = arith.constant dense<0.000000e+00> : vector<8xf32>
    %162 = vector.multi_reduction <add>, %161, %cst_53 [1] : vector<8x8xf32> to vector<8xf32>
    %163 = vector.shape_cast %162 : vector<8xf32> to vector<8x1xf32>
    %164 = tpu.reciprocal %163 {approx = true} : vector<8x1xf32> -> vector<8x1xf32>
    %165 = vector.broadcast %164 : vector<8x1xf32> to vector<8x8xf32>
    %166 = arith.mulf %161, %165 : vector<8x8xf32>
    %167 = arith.truncf %166 : vector<8x8xf32> to vector<8x8xbf16>
    %168 = arith.truncf %152 : vector<8x8xf32> to vector<8x8xbf16>
    %cst_54 = arith.constant dense<0.000000e+00> : vector<8x8xf32>
    %169 = tpu.matmul %167, %168, %cst_54 {dimension_numbers = #tpu.dot_dimension_numbers<[1], [0], [0], [1], [0, 0, 1, 1], [], []>} : vector<8x8xbf16>, vector<8x8xbf16>, vector<8x8xf32> -> vector<8x8xf32>
    %170 = arith.truncf %169 : vector<8x8xf32> to vector<8x8xbf16>
    %c0_55 = arith.constant 0 : index
    %c0_56 = arith.constant 0 : index
    %171 = vector.load %arg5[%c0_55, %c0_56] : memref<32x32xbf16, #tpu.memory_space<vmem>>, vector<8x32xbf16>
    %cst_57 = arith.constant dense<0.000000e+00> : vector<8x32xf32>
    %172 = tpu.matmul %170, %171, %cst_57 {dimension_numbers = #tpu.dot_dimension_numbers<[1], [0], [0], [1], [0, 0, 1, 1], [], []>} : vector<8x8xbf16>, vector<8x32xbf16>, vector<8x32xf32> -> vector<8x32xf32>
    %173 = arith.addf %149, %172 : vector<8x32xf32>
    %174 = vector.extract_strided_slice %32 {offsets = [8, 8], sizes = [8, 8], strides = [1, 1]} : vector<16x96xf32> to vector<8x8xf32>
    %175 = vector.extract_strided_slice %32 {offsets = [8, 40], sizes = [8, 8], strides = [1, 1]} : vector<16x96xf32> to vector<8x8xf32>
    %176 = vector.extract_strided_slice %32 {offsets = [8, 72], sizes = [8, 8], strides = [1, 1]} : vector<16x96xf32> to vector<8x8xf32>
    %cst_58 = arith.constant dense<0.000000e+00> : vector<8x8xf32>
    %177 = tpu.matmul %174, %175, %cst_58 {dimension_numbers = #tpu.dot_dimension_numbers<[1], [1], [0], [0], [0, 0, 1, 0], [], []>} : vector<8x8xf32>, vector<8x8xf32>, vector<8x8xf32> -> vector<8x8xf32>
    %cst_59 = arith.constant 0.353553385 : f32
    %178 = vector.broadcast %cst_59 : f32 to vector<8x8xf32>
    %179 = arith.mulf %177, %178 : vector<8x8xf32>
    %180 = arith.addf %179, %148 : vector<8x8xf32>
    %cst_60 = arith.constant dense<0xFF800000> : vector<8xf32>
    %181 = vector.multi_reduction <maximumf>, %180, %cst_60 [1] : vector<8x8xf32> to vector<8xf32>
    %182 = vector.shape_cast %181 : vector<8xf32> to vector<8x1xf32>
    %183 = vector.broadcast %182 : vector<8x1xf32> to vector<8x8xf32>
    %184 = arith.subf %180, %183 : vector<8x8xf32>
    %185 = math.exp %184 : vector<8x8xf32>
    %cst_61 = arith.constant dense<0.000000e+00> : vector<8xf32>
    %186 = vector.multi_reduction <add>, %185, %cst_61 [1] : vector<8x8xf32> to vector<8xf32>
    %187 = vector.shape_cast %186 : vector<8xf32> to vector<8x1xf32>
    %188 = tpu.reciprocal %187 {approx = true} : vector<8x1xf32> -> vector<8x1xf32>
    %189 = vector.broadcast %188 : vector<8x1xf32> to vector<8x8xf32>
    %190 = arith.mulf %185, %189 : vector<8x8xf32>
    %191 = arith.truncf %190 : vector<8x8xf32> to vector<8x8xbf16>
    %192 = arith.truncf %176 : vector<8x8xf32> to vector<8x8xbf16>
    %cst_62 = arith.constant dense<0.000000e+00> : vector<8x8xf32>
    %193 = tpu.matmul %191, %192, %cst_62 {dimension_numbers = #tpu.dot_dimension_numbers<[1], [0], [0], [1], [0, 0, 1, 1], [], []>} : vector<8x8xbf16>, vector<8x8xbf16>, vector<8x8xf32> -> vector<8x8xf32>
    %194 = arith.truncf %193 : vector<8x8xf32> to vector<8x8xbf16>
    %c8_63 = arith.constant 8 : index
    %c0_64 = arith.constant 0 : index
    %195 = vector.load %arg5[%c8_63, %c0_64] : memref<32x32xbf16, #tpu.memory_space<vmem>>, vector<8x32xbf16>
    %cst_65 = arith.constant dense<0.000000e+00> : vector<8x32xf32>
    %196 = tpu.matmul %194, %195, %cst_65 {dimension_numbers = #tpu.dot_dimension_numbers<[1], [0], [0], [1], [0, 0, 1, 1], [], []>} : vector<8x8xbf16>, vector<8x32xbf16>, vector<8x32xf32> -> vector<8x32xf32>
    %197 = arith.addf %173, %196 : vector<8x32xf32>
    %198 = vector.extract_strided_slice %32 {offsets = [8, 16], sizes = [8, 8], strides = [1, 1]} : vector<16x96xf32> to vector<8x8xf32>
    %199 = vector.extract_strided_slice %32 {offsets = [8, 48], sizes = [8, 8], strides = [1, 1]} : vector<16x96xf32> to vector<8x8xf32>
    %200 = vector.extract_strided_slice %32 {offsets = [8, 80], sizes = [8, 8], strides = [1, 1]} : vector<16x96xf32> to vector<8x8xf32>
    %cst_66 = arith.constant dense<0.000000e+00> : vector<8x8xf32>
    %201 = tpu.matmul %198, %199, %cst_66 {dimension_numbers = #tpu.dot_dimension_numbers<[1], [1], [0], [0], [0, 0, 1, 0], [], []>} : vector<8x8xf32>, vector<8x8xf32>, vector<8x8xf32> -> vector<8x8xf32>
    %cst_67 = arith.constant 0.353553385 : f32
    %202 = vector.broadcast %cst_67 : f32 to vector<8x8xf32>
    %203 = arith.mulf %201, %202 : vector<8x8xf32>
    %204 = arith.addf %203, %148 : vector<8x8xf32>
    %cst_68 = arith.constant dense<0xFF800000> : vector<8xf32>
    %205 = vector.multi_reduction <maximumf>, %204, %cst_68 [1] : vector<8x8xf32> to vector<8xf32>
    %206 = vector.shape_cast %205 : vector<8xf32> to vector<8x1xf32>
    %207 = vector.broadcast %206 : vector<8x1xf32> to vector<8x8xf32>
    %208 = arith.subf %204, %207 : vector<8x8xf32>
    %209 = math.exp %208 : vector<8x8xf32>
    %cst_69 = arith.constant dense<0.000000e+00> : vector<8xf32>
    %210 = vector.multi_reduction <add>, %209, %cst_69 [1] : vector<8x8xf32> to vector<8xf32>
    %211 = vector.shape_cast %210 : vector<8xf32> to vector<8x1xf32>
    %212 = tpu.reciprocal %211 {approx = true} : vector<8x1xf32> -> vector<8x1xf32>
    %213 = vector.broadcast %212 : vector<8x1xf32> to vector<8x8xf32>
    %214 = arith.mulf %209, %213 : vector<8x8xf32>
    %215 = arith.truncf %214 : vector<8x8xf32> to vector<8x8xbf16>
    %216 = arith.truncf %200 : vector<8x8xf32> to vector<8x8xbf16>
    %cst_70 = arith.constant dense<0.000000e+00> : vector<8x8xf32>
    %217 = tpu.matmul %215, %216, %cst_70 {dimension_numbers = #tpu.dot_dimension_numbers<[1], [0], [0], [1], [0, 0, 1, 1], [], []>} : vector<8x8xbf16>, vector<8x8xbf16>, vector<8x8xf32> -> vector<8x8xf32>
    %218 = arith.truncf %217 : vector<8x8xf32> to vector<8x8xbf16>
    %c16_71 = arith.constant 16 : index
    %c0_72 = arith.constant 0 : index
    %219 = vector.load %arg5[%c16_71, %c0_72] : memref<32x32xbf16, #tpu.memory_space<vmem>>, vector<8x32xbf16>
    %cst_73 = arith.constant dense<0.000000e+00> : vector<8x32xf32>
    %220 = tpu.matmul %218, %219, %cst_73 {dimension_numbers = #tpu.dot_dimension_numbers<[1], [0], [0], [1], [0, 0, 1, 1], [], []>} : vector<8x8xbf16>, vector<8x32xbf16>, vector<8x32xf32> -> vector<8x32xf32>
    %221 = arith.addf %197, %220 : vector<8x32xf32>
    %222 = vector.extract_strided_slice %32 {offsets = [8, 24], sizes = [8, 8], strides = [1, 1]} : vector<16x96xf32> to vector<8x8xf32>
    %223 = vector.extract_strided_slice %32 {offsets = [8, 56], sizes = [8, 8], strides = [1, 1]} : vector<16x96xf32> to vector<8x8xf32>
    %224 = vector.extract_strided_slice %32 {offsets = [8, 88], sizes = [8, 8], strides = [1, 1]} : vector<16x96xf32> to vector<8x8xf32>
    %cst_74 = arith.constant dense<0.000000e+00> : vector<8x8xf32>
    %225 = tpu.matmul %222, %223, %cst_74 {dimension_numbers = #tpu.dot_dimension_numbers<[1], [1], [0], [0], [0, 0, 1, 0], [], []>} : vector<8x8xf32>, vector<8x8xf32>, vector<8x8xf32> -> vector<8x8xf32>
    %cst_75 = arith.constant 0.353553385 : f32
    %226 = vector.broadcast %cst_75 : f32 to vector<8x8xf32>
    %227 = arith.mulf %225, %226 : vector<8x8xf32>
    %228 = arith.addf %227, %148 : vector<8x8xf32>
    %cst_76 = arith.constant dense<0xFF800000> : vector<8xf32>
    %229 = vector.multi_reduction <maximumf>, %228, %cst_76 [1] : vector<8x8xf32> to vector<8xf32>
    %230 = vector.shape_cast %229 : vector<8xf32> to vector<8x1xf32>
    %231 = vector.broadcast %230 : vector<8x1xf32> to vector<8x8xf32>
    %232 = arith.subf %228, %231 : vector<8x8xf32>
    %233 = math.exp %232 : vector<8x8xf32>
    %cst_77 = arith.constant dense<0.000000e+00> : vector<8xf32>
    %234 = vector.multi_reduction <add>, %233, %cst_77 [1] : vector<8x8xf32> to vector<8xf32>
    %235 = vector.shape_cast %234 : vector<8xf32> to vector<8x1xf32>
    %236 = tpu.reciprocal %235 {approx = true} : vector<8x1xf32> -> vector<8x1xf32>
    %237 = vector.broadcast %236 : vector<8x1xf32> to vector<8x8xf32>
    %238 = arith.mulf %233, %237 : vector<8x8xf32>
    %239 = arith.truncf %238 : vector<8x8xf32> to vector<8x8xbf16>
    %240 = arith.truncf %224 : vector<8x8xf32> to vector<8x8xbf16>
    %cst_78 = arith.constant dense<0.000000e+00> : vector<8x8xf32>
    %241 = tpu.matmul %239, %240, %cst_78 {dimension_numbers = #tpu.dot_dimension_numbers<[1], [0], [0], [1], [0, 0, 1, 1], [], []>} : vector<8x8xbf16>, vector<8x8xbf16>, vector<8x8xf32> -> vector<8x8xf32>
    %242 = arith.truncf %241 : vector<8x8xf32> to vector<8x8xbf16>
    %c24_79 = arith.constant 24 : index
    %c0_80 = arith.constant 0 : index
    %243 = vector.load %arg5[%c24_79, %c0_80] : memref<32x32xbf16, #tpu.memory_space<vmem>>, vector<8x32xbf16>
    %cst_81 = arith.constant dense<0.000000e+00> : vector<8x32xf32>
    %244 = tpu.matmul %242, %243, %cst_81 {dimension_numbers = #tpu.dot_dimension_numbers<[1], [0], [0], [1], [0, 0, 1, 1], [], []>} : vector<8x8xbf16>, vector<8x32xbf16>, vector<8x32xf32> -> vector<8x32xf32>
    %245 = arith.addf %221, %244 : vector<8x32xf32>
    %246 = tpu.concatenate %139, %245 in 0 : vector<8x32xf32>, vector<8x32xf32> -> vector<16x32xf32>
    %c0_82 = arith.constant 0 : index
    %c0_83 = arith.constant 0 : index
    %247 = vector.load %arg6[%c0_82, %c0_83] : memref<1x32xf32, #tpu.memory_space<vmem>>, vector<1x32xf32>
    %248 = vector.broadcast %247 : vector<1x32xf32> to vector<16x32xf32>
    %249 = arith.addf %246, %248 : vector<16x32xf32>
    %250 = arith.addf %249, %0 : vector<16x32xf32>
    %c0_84 = arith.constant 0 : index
    %c0_85 = arith.constant 0 : index
    %251 = vector.load %arg9[%c0_84, %c0_85] : memref<1x32xf32, #tpu.memory_space<vmem>>, vector<1x32xf32>
    %c0_86 = arith.constant 0 : index
    %c0_87 = arith.constant 0 : index
    %252 = vector.load %arg10[%c0_86, %c0_87] : memref<1x32xf32, #tpu.memory_space<vmem>>, vector<1x32xf32>
    %cst_88 = arith.constant dense<0.000000e+00> : vector<16xf32>
    %253 = vector.multi_reduction <add>, %250, %cst_88 [1] : vector<16x32xf32> to vector<16xf32>
    %254 = vector.shape_cast %253 : vector<16xf32> to vector<16x1xf32>
    %cst_89 = arith.constant 3.200000e+01 : f32
    %255 = vector.broadcast %cst_89 : f32 to vector<16x1xf32>
    %256 = arith.divf %254, %255 : vector<16x1xf32>
    %257 = vector.broadcast %256 : vector<16x1xf32> to vector<16x32xf32>
    %258 = arith.subf %250, %257 : vector<16x32xf32>
    %259 = vector.broadcast %256 : vector<16x1xf32> to vector<16x32xf32>
    %260 = arith.subf %250, %259 : vector<16x32xf32>
    %261 = arith.mulf %258, %260 : vector<16x32xf32>
    %cst_90 = arith.constant dense<0.000000e+00> : vector<16xf32>
    %262 = vector.multi_reduction <add>, %261, %cst_90 [1] : vector<16x32xf32> to vector<16xf32>
    %263 = vector.shape_cast %262 : vector<16xf32> to vector<16x1xf32>
    %cst_91 = arith.constant 3.200000e+01 : f32
    %264 = vector.broadcast %cst_91 : f32 to vector<16x1xf32>
    %265 = arith.divf %263, %264 : vector<16x1xf32>
    %266 = vector.broadcast %256 : vector<16x1xf32> to vector<16x32xf32>
    %267 = arith.subf %250, %266 : vector<16x32xf32>
    %cst_92 = arith.constant 9.99999997E-7 : f32
    %268 = vector.broadcast %cst_92 : f32 to vector<16x1xf32>
    %269 = arith.addf %265, %268 : vector<16x1xf32>
    %270 = math.rsqrt %269 : vector<16x1xf32>
    %271 = vector.broadcast %270 : vector<16x1xf32> to vector<16x32xf32>
    %272 = arith.mulf %267, %271 : vector<16x32xf32>
    %273 = vector.broadcast %251 : vector<1x32xf32> to vector<16x32xf32>
    %274 = arith.mulf %272, %273 : vector<16x32xf32>
    %275 = vector.broadcast %252 : vector<1x32xf32> to vector<16x32xf32>
    %276 = arith.addf %274, %275 : vector<16x32xf32>
    %277 = arith.truncf %276 : vector<16x32xf32> to vector<16x32xbf16>
    %c0_93 = arith.constant 0 : index
    %c0_94 = arith.constant 0 : index
    %278 = vector.load %arg11[%c0_93, %c0_94] : memref<32x64xbf16, #tpu.memory_space<vmem>>, vector<32x64xbf16>
    %cst_95 = arith.constant dense<0.000000e+00> : vector<16x64xf32>
    %279 = tpu.matmul %277, %278, %cst_95 {dimension_numbers = #tpu.dot_dimension_numbers<[1], [0], [0], [1], [0, 0, 1, 1], [], []>} : vector<16x32xbf16>, vector<32x64xbf16>, vector<16x64xf32> -> vector<16x64xf32>
    %c0_96 = arith.constant 0 : index
    %c0_97 = arith.constant 0 : index
    %280 = vector.load %arg12[%c0_96, %c0_97] : memref<1x64xf32, #tpu.memory_space<vmem>>, vector<1x64xf32>
    %281 = vector.broadcast %280 : vector<1x64xf32> to vector<16x64xf32>
    %282 = arith.addf %279, %281 : vector<16x64xf32>
    %cst_98 = arith.constant 0.000000e+00 : f32
    %283 = vector.broadcast %cst_98 : f32 to vector<16x64xf32>
    %284 = arith.maximumf %282, %283 : vector<16x64xf32>
    %285 = arith.truncf %284 : vector<16x64xf32> to vector<16x64xbf16>
    %c0_99 = arith.constant 0 : index
    %c0_100 = arith.constant 0 : index
    %286 = vector.load %arg13[%c0_99, %c0_100] : memref<64x32xbf16, #tpu.memory_space<vmem>>, vector<64x32xbf16>
    %cst_101 = arith.constant dense<0.000000e+00> : vector<16x32xf32>
    %287 = tpu.matmul %285, %286, %cst_101 {dimension_numbers = #tpu.dot_dimension_numbers<[1], [0], [0], [1], [0, 0, 1, 1], [], []>} : vector<16x64xbf16>, vector<64x32xbf16>, vector<16x32xf32> -> vector<16x32xf32>
    %c0_102 = arith.constant 0 : index
    %c0_103 = arith.constant 0 : index
    %288 = vector.load %arg14[%c0_102, %c0_103] : memref<1x32xf32, #tpu.memory_space<vmem>>, vector<1x32xf32>
    %289 = vector.broadcast %288 : vector<1x32xf32> to vector<16x32xf32>
    %290 = arith.addf %287, %289 : vector<16x32xf32>
    %291 = arith.addf %290, %250 : vector<16x32xf32>
    %c0_104 = arith.constant 0 : index
    %c0_105 = arith.constant 0 : index
    %292 = vector.load %arg15[%c0_104, %c0_105] : memref<16x32xf32, #tpu.memory_space<vmem>>, vector<16x32xf32>
    tpu.vector_store %arg15[%c0_104, %c0_105], %291 {strides = array<i32>} : memref<16x32xf32, #tpu.memory_space<vmem>>, vector<16x32xf32>,
    return
  }
  func.func @transform_0(%arg0: i32, %arg1: memref<2xi32, #tpu.memory_space<smem>>) -> (i32, i32) {
    %c0_i32 = arith.constant 0 : i32
    %c0_i32_0 = arith.constant 0 : i32
    return %arg0, %c0_i32 : i32, i32
  }
  func.func @transform_1(%arg0: i32, %arg1: memref<2xi32, #tpu.memory_space<smem>>) -> (i32, i32) {
    %c0_i32 = arith.constant 0 : i32
    %c0_i32_0 = arith.constant 0 : i32
    %c0_i32_1 = arith.constant 0 : i32
    return %c0_i32, %c0_i32_0 : i32, i32
  }
  func.func @transform_2(%arg0: i32, %arg1: memref<2xi32, #tpu.memory_space<smem>>) -> (i32, i32) {
    %c0_i32 = arith.constant 0 : i32
    %c0_i32_0 = arith.constant 0 : i32
    %c0_i32_1 = arith.constant 0 : i32
    return %c0_i32, %c0_i32_0 : i32, i32
  }
  func.func @transform_3(%arg0: i32, %arg1: memref<2xi32, #tpu.memory_space<smem>>) -> (i32, i32) {
    %c0_i32 = arith.constant 0 : i32
    %c0_i32_0 = arith.constant 0 : i32
    %c0_i32_1 = arith.constant 0 : i32
    return %c0_i32, %c0_i32_0 : i32, i32
  }
  func.func @transform_4(%arg0: i32, %arg1: memref<2xi32, #tpu.memory_space<smem>>) -> (i32, i32) {
    %c0_i32 = arith.constant 0 : i32
    %c0_i32_0 = arith.constant 0 : i32
    %c0_i32_1 = arith.constant 0 : i32
    return %c0_i32, %c0_i32_0 : i32, i32
  }
  func.func @transform_5(%arg0: i32, %arg1: memref<2xi32, #tpu.memory_space<smem>>) -> (i32, i32) {
    %c0_i32 = arith.constant 0 : i32
    %c0_i32_0 = arith.constant 0 : i32
    %c0_i32_1 = arith.constant 0 : i32
    return %c0_i32, %c0_i32_0 : i32, i32
  }
  func.func @transform_6(%arg0: i32, %arg1: memref<2xi32, #tpu.memory_space<smem>>) -> (i32, i32) {
    %c0_i32 = arith.constant 0 : i32
    %c0_i32_0 = arith.constant 0 : i32
    %c0_i32_1 = arith.constant 0 : i32
    return %c0_i32, %c0_i32_0 : i32, i32
  }
  func.func @transform_7(%arg0: i32, %arg1: memref<2xi32, #tpu.memory_space<smem>>) -> (i32, i32) {
    %c0_i32 = arith.constant 0 : i32
    %c0_i32_0 = arith.constant 0 : i32
    %c0_i32_1 = arith.constant 0 : i32
    return %c0_i32, %c0_i32_0 : i32, i32
  }
  func.func @transform_8(%arg0: i32, %arg1: memref<2xi32, #tpu.memory_space<smem>>) -> (i32, i32) {
    %c0_i32 = arith.constant 0 : i32
    %c0_i32_0 = arith.constant 0 : i32
    %c0_i32_1 = arith.constant 0 : i32
    return %c0_i32, %c0_i32_0 : i32, i32
  }
  func.func @transform_9(%arg0: i32, %arg1: memref<2xi32, #tpu.memory_space<smem>>) -> (i32, i32) {
    %c0_i32 = arith.constant 0 : i32
    %c0_i32_0 = arith.constant 0 : i32
    %c0_i32_1 = arith.constant 0 : i32
    return %c0_i32, %c0_i32_0 : i32, i32
  }
  func.func @transform_10(%arg0: i32, %arg1: memref<2xi32, #tpu.memory_space<smem>>) -> (i32, i32) {
    %c0_i32 = arith.constant 0 : i32
    %c0_i32_0 = arith.constant 0 : i32
    %c0_i32_1 = arith.constant 0 : i32
    return %c0_i32, %c0_i32_0 : i32, i32
  }
  func.func @transform_11(%arg0: i32, %arg1: memref<2xi32, #tpu.memory_space<smem>>) -> (i32, i32) {
    %c0_i32 = arith.constant 0 : i32
    %c0_i32_0 = arith.constant 0 : i32
    %c0_i32_1 = arith.constant 0 : i32
    return %c0_i32, %c0_i32_0 : i32, i32
  }
  func.func @transform_12(%arg0: i32, %arg1: memref<2xi32, #tpu.memory_space<smem>>) -> (i32, i32) {
    %c0_i32 = arith.constant 0 : i32
    %c0_i32_0 = arith.constant 0 : i32
    %c0_i32_1 = arith.constant 0 : i32
    return %c0_i32, %c0_i32_0 : i32, i32
  }
  func.func @transform_13(%arg0: i32, %arg1: memref<2xi32, #tpu.memory_space<smem>>) -> (i32, i32) {
    %c0_i32 = arith.constant 0 : i32
    %c0_i32_0 = arith.constant 0 : i32
    return %arg0, %c0_i32 : i32, i32
  }
}

</mosaic_0001>

<bundles_post_ra>
// kernel: tpu_custom_call.1
= control target key start
LH: loop header
LB: loop body
LE: loop exit
PB: predicated region body
PF: predicated region fallthrough
CT: control target
= control target key end

     0   :  { %s1244_s16 = smov [#allocation3]   ;;  %s1609_s0 = inlined_call_operand.hbm [shape: s32[2], index: 0, kind: input, shape index: {}]   ;;  %s1610_s1 = inlined_call_operand.vmem [shape: f32[16,32], index: 1, kind: input, shape index: {}]   ;;  %s1611_s2 = inlined_call_operand.vmem [shape: bf16[32,96], index: 2, kind: input, shape index: {}]   ;;  %s1612_s3 = inlined_call_operand.vmem [shape: f32[1,96], index: 3, kind: input, shape index: {}]   ;;  %s1613_s4 = inlined_call_operand.vmem [shape: bf16[32,32], index: 4, kind: input, shape index: {}]   ;;  %s1614_s5 = inlined_call_operand.vmem [shape: f32[1,32], index: 5, kind: input, shape index: {}]   ;;  %s1615_s6 = inlined_call_operand.vmem [shape: f32[1,32], index: 6, kind: input, shape index: {}]   ;;  %s1616_s7 = inlined_call_operand.vmem [shape: f32[1,32], index: 7, kind: input, shape index: {}]   ;;  %s1617_s8 = inlined_call_operand.vmem [shape: f32[1,32], index: 8, kind: input, shape index: {}]   ;;  %s1618_s9 = inlined_call_operand.vmem [shape: f32[1,32], index: 9, kind: input, shape index: {}]   ;;  %s1619_s10 = inlined_call_operand.hbm [shape: bf16[32,64], index: 10, kind: input, shape index: {}]   ;;  %s1620_s11 = inlined_call_operand.vmem [shape: f32[1,64], index: 11, kind: input, shape index: {}]   ;;  %s1621_s12 = inlined_call_operand.vmem [shape: bf16[64,32], index: 12, kind: input, shape index: {}]   ;;  %s1622_s13 = inlined_call_operand.vmem [shape: f32[1,32], index: 13, kind: input, shape index: {}]   ;;  %s1623_s14 = inlined_call_operand.hbm [shape: f32[16,32], index: 14, kind: output, shape index: {}]  }
   0x1   :  { %s20_s15 = sshll.u32 %s1609_s0, 4  ;;  %s21_s15 = int_to_ptr.hbm [resolvable:$true] %s20_s15 }
   0x2   :  { %23 = dma.hbm_to_smem %s21_s15, 16, %s1244_s16, [#allocation2] }
   0x3   :  { %1238 = dma.done.wait [#allocation2], 16 }
   0x4   :  { %1239 = vsyncadd [#allocation2], 4294967280 }
   0x5   :  { %26 = sfence }
   0x6   :  { %27 = vsyncpa [#allocation5], 0 }
   0x7   :  { %28 = vsyncpa [#allocation6], 0  ;;  %s51_s19 = sshll.u32 %s1619_s10, 4  ;;  %s1245_s20 = smov [#allocation4]   ;;  %s52_s19 = int_to_ptr.hbm [resolvable:$true] %s51_s19 }
   0x8   :  { %s53_s21 = sshll.u32 %s1245_s20, 4  ;;  %s1246_s22 = smov 64   ;;  %s54_s21 = int_to_ptr.vmem [resolvable:$true] %s53_s21 }
   0x9   :  { %s1247_s23 = smov 4  }
   0xa   :  { %59 = dma.hbm_to_vmem [thread:$0]  %s52_s19, 256, %s54_s21, [#allocation5], %s1246_s22, %s1246_s22, %s1247_s23  }
   0xb   :  { %1240 = dma.done.wait [#allocation5], 256  }
   0xc   :  { %1241 = vsyncadd [#allocation5], 4294967040  ;;  %vm75_vm0 = vcmask 261120   ;;  %v1349_v0 = vld [vmem:[%s1610_s1] sm:$0xff]  ;;  %v1356_v2 = vld [vmem:[%s1610_s1 + $0x8] sm:$0xff]  ;;  %v1248_v4 = vmov 32.0   ;;  %v175_v60 = vlaneseq }
   0xd   :  { %v76_v1 = vsel %vm75_vm0, %v1349_v0, 0.0  ;;  %v79_v3 = vsel %vm75_vm0, %v1356_v2, 0.0  ;;  %1136 = vrcp.f32 %v1248_v4  ;;  %v1102_v21 = vld [vmem:[%s1611_s2 + $0x8] sm:$0xff]  ;;  %v1101_v23 = vld [vmem:[%s1611_s2] sm:$0xff]  ;;  %s1250_s18 = smov 80   ;;  %s1252_s19 = smov 120  }
   0xe   :  { %77 = vadd.xlane.f32.xlu0 %v76_v1  ;;  %167 = vmatpush.bf16.msra.mxu0 %v1102_v21  ;;  %v1128_v42 = vld [vmem:[%s1615_s6] ss:$0 sm:$0xff]  ;;  %s1249_s6 = smov 112   ;;  %vm185_vm8 = vcmask 64512   ;;  %s178_s20 = sld [smem:[#allocation3]]  ;;  %v1405_v61 = vand.u32 127, %v175_v60 }
   0xf   :  { %v1129_v47 = vld [vmem:[%s1616_s7] ss:$0 sm:$0xff]  ;;  %s1251_s7 = smov 88   ;;  %v1254_v1 = vmov -1e+09   ;;  %s1255_s21 = smov 56  }
  0x10   :  { %v1130_v52 = vld [vmem:[%s1612_s3] ss:$0 sm:$0xff]  ;;  %s1253_s3 = smov 96   ;;  %s1256_s23 = smov 104   ;;  %vm231_vm10 = vcmask 1043456  }
  0x11   :  { %s1257_s0 = smov 48   ;;  %s1258_s24 = smov 72  }
  0x12   :  { %168 = vmatpush.bf16.msra.mxu0 %v1101_v23  ;;  %s1058_s27 = sld [smem:[#allocation3 + $0x1]]  ;;  %s1259_s28 = smov 40  }
  0x13   :  { %v1137_v5 = vpop.eup %1136  ;;  %s1020_s26 = sshll.u32 %s1623_s14, 4  ;;  %s1021_s26 = int_to_ptr.hbm [resolvable:$true] %s1020_s26 }
  0x14   :  { %v83_v6 = vmul.f32 32.0, %v1137_v5  ;;  %vm87_vm1 = vweird.f32 %v1137_v5  ;;  %v179_v62 = vstv %s178_s20 }
  0x15   :  { %vm180_vm9 = vcmp.lt.s32.totalorder %v1405_v61, %v179_v62 }
  0x16   :  { %80 = vadd.xlane.f32.xlu0 %v79_v3  ;;  %v84_v7 = vsub.f32 1.0, %v83_v6  ;;  %v1409_v3 = vsel %vm180_vm9, 0.0, %v1254_v1 }
  0x18   :  { %v85_v8 = vmul.f32 %v1137_v5, %v84_v7 }
  0x1a   :  { %v86_v9 = vadd.f32 %v1137_v5, %v85_v8 }
  0x1c   :  { %v1360_v10 = vsel %vm87_vm1, %v1137_v5, %v86_v9 }
  0x81   :  { %v78_v11 = vpop.xlane.xlu0 %77 }
  0x82   :  { %v89_v12 = vmul.f32 %v1360_v10, %v78_v11 }
  0x84   :  { %v91_v13 = vsub.f32 %v1349_v0, %v89_v12 }
  0x86   :  { %v93_v14 = vmul.f32 %v91_v13, %v91_v13 }
  0x88   :  { %v95_v15 = vsel %vm75_vm0, %v93_v14, 0.0 }
  0x89   :  { %96 = vadd.xlane.f32.xlu1 %v95_v15  ;;  %v81_v16 = vpop.xlane.xlu0 %80 }
  0x8a   :  { %v90_v17 = vmul.f32 %v1360_v10, %v81_v16 }
  0x8c   :  { %v92_v18 = vsub.f32 %v1356_v2, %v90_v17 }
  0x8e   :  { %v94_v19 = vmul.f32 %v92_v18, %v92_v18 }
  0x90   :  { %v98_v20 = vsel %vm75_vm0, %v94_v19, 0.0 }
  0x91   :  { %99 = vadd.xlane.f32.xlu1 %v98_v20 }
  0xfc   :  { %v97_v22 = vpop.xlane.xlu1 %96 }
  0xfd   :  { %v101_v24 = vmul.f32 %v97_v22, %v1360_v10 }
  0xff   :  { %v103_v25 = vadd.f32 1e-06, %v101_v24 }
 0x101   :  { %1138 = vrsqrt.f32 %v103_v25  ;;  %vm111_vm3 = vweird.f32 %v103_v25 }
 0x104   :  { %v100_v26 = vpop.xlane.xlu1 %99 }
 0x105   :  { %v102_v27 = vmul.f32 %v100_v26, %v1360_v10 }
 0x107   :  { %v1139_v28 = vpop.eup %1138  ;;  %v104_v29 = vadd.f32 1e-06, %v102_v27 }
 0x108   :  { %v106_v30 = vmul.f32 %v1139_v28, %v103_v25  ;;  %vm112_vm2 = vweird.f32 %v1139_v28 }
 0x109   :  { %1140 = vrsqrt.f32 %v104_v29  ;;  %vm113_vm4 = vmor %vm111_vm3, %vm112_vm2  ;;  %vm121_vm6 = vweird.f32 %v104_v29  ;;  %vm992_vm3 = vcmask 523264  }
 0x10a   :  { %v107_v31 = vmul.f32 %v1139_v28, %v106_v30 }
 0x10c   :  { %v108_v32 = vmul.f32 0.5, %v107_v31 }
 0x10e   :  { %v109_v33 = vsub.f32 1.5, %v108_v32 }
 0x10f   :  { %v1141_v34 = vpop.eup %1140 }
 0x110   :  { %v110_v35 = vmul.f32 %v1139_v28, %v109_v33  ;;  %v116_v36 = vmul.f32 %v1141_v34, %v104_v29  ;;  %vm122_vm5 = vweird.f32 %v1141_v34 }
 0x111   :  { %vm123_vm7 = vmor %vm121_vm6, %vm122_vm5 }
 0x112   :  { %v117_v37 = vmul.f32 %v1141_v34, %v116_v36  ;;  %v114_v38 = vsel %vm113_vm4, %v1139_v28, %v110_v35 }
 0x113   :  { %v125_v41 = vmul.f32 %v114_v38, %v91_v13 }
 0x114   :  { %v118_v39 = vmul.f32 0.5, %v117_v37 }
 0x115   :  { %v130_v46 = vmul.f32 %v1128_v42, %v125_v41 }
 0x116   :  { %v119_v40 = vsub.f32 1.5, %v118_v39 }
 0x117   :  { %v135_v49 = vadd.f32 %v1129_v47, %v130_v46 }
 0x118   :  { %v120_v43 = vmul.f32 %v1141_v34, %v119_v40 }
 0x11a   :  { %v124_v44 = vsel %vm123_vm7, %v1141_v34, %v120_v43 }
 0x11b   :  { %v126_v45 = vmul.f32 %v124_v44, %v92_v18 }
 0x11d   :  { %v131_v48 = vmul.f32 %v1128_v42, %v126_v45 }
 0x11f   :  { %v136_v50 = vadd.f32 %v1129_v47, %v131_v48 }
 0x121   :  { %v137_v51 = vpack.c.bf16 %v136_v50, %v135_v49 }
 0x123   :  { %1041 = vmatmul.msk.bf16.vlgmr.msra.gmra.mxu0 %vm75_vm0, %v137_v51 }
 0x1a0   :  { %v170_v53 = vpop.f32.mrf.mxu0 }
 0x1a1   :  { %v1386_v54 = vadd.f32 %v1130_v52, %v170_v53  ;;  %v314_v53 = vld [vmem:[%s1613_s4 + $0x4] sm:$0xf] }
 0x1a3   :  { %353 = vrot.lane.b32.xlu1 %v1386_v54, %s1249_s6  ;;  %355 = vrot.lane.b32.xlu0 %v1386_v54, %s1250_s18  ;;  %v1417_v13 = vpack.c.bf16 %v1386_v54, %v1386_v54 }
 0x1a4   :  { %252 = vrot.lane.b32.xlu2 %v1386_v54, %s1251_s7 }
 0x1a8   :  { %v172_v6 = vpop.f32.mrf.mxu0 }
 0x1a9   :  { %v1423_v14 = vadd.f32 %v1130_v52, %v172_v6 }
 0x1ac   :  { %250 = vrot.lane.b32.xlu2 %v1386_v54, %s1252_s19 }
 0x1b4   :  { %183 = vrot.lane.b32.xlu2 %v1386_v54, %s1253_s3 }
 0x1fe   :  { %v253_v55 = vpop.permute.xlu2 %252 }
 0x1ff   :  { %1045 = vmatpush.xpose.msk.msra.mxu3 %vm185_vm8, %v253_v55  ;;  %v417_v55 = vld [vmem:[%s1613_s4 + $0x8] sm:$0xf] }
 0x206   :  { %v251_v56 = vpop.permute.xlu2 %250 }
 0x207   :  { %1046 = vmatmul.msk.f32.vlgmr.msra.gmra.mxu3 %vm185_vm8, %v251_v56  ;;  %v1465_v56 = vsel %vm231_vm10, %v417_v55, 0 }
 0x20e   :  { %v184_v57 = vpop.permute.xlu2 %183 }
 0x20f   :  { %1042 = vmatpush.xpose.msk.msra.mxu1 %vm185_vm8, %v184_v57 }
 0x212   :  { %1043 = vmatmul.msk.f32.vlgmr.msra.gmra.mxu1 %vm185_vm8, %v1386_v54 }
 0x215   :  { %v356_v58 = vpop.permute.xlu0 %355  ;;  %v354_v59 = vpop.permute.xlu1 %353 }
 0x216   :  { %1050 = vmatpush.xpose.msk.msrb.mxu0 %vm185_vm8, %v356_v58 }
 0x219   :  { %1051 = vmatmul.msk.f32.vlgmr.msrb.gmra.mxu0 %vm185_vm8, %v354_v59 }
 0x28a   :  { %v275_v63 = vpop.f32.mrf.mxu3 }
 0x28b   :  { %v278_v4 = vmul.f32 0.35355338, %v275_v63 }
 0x28d   :  { %v279_v5 = vadd.f32 %v278_v4, %v1409_v3 }
 0x28f   :  { %v280_v7 = vsel %vm185_vm8, %v279_v5, -inf  ;;  %v207_v27 = vpop.f32.mrf.mxu1 }
 0x290   :  { %281 = vmax.xlane.f32.xlu2 %v280_v7  ;;  %v210_v28 = vmul.f32 0.35355338, %v207_v27 }
 0x292   :  { %v211_v29 = vadd.f32 %v210_v28, %v1409_v3 }
 0x294   :  { %v212_v30 = vsel %vm185_vm8, %v211_v29, -inf }
 0x296   :  { %v378_v8 = vpop.f32.mrf.mxu0 }
 0x297   :  { %v381_v9 = vmul.f32 0.35355338, %v378_v8 }
 0x299   :  { %v382_v11 = vadd.f32 %v381_v9, %v1409_v3  ;;  %v525_v9 = vstv %s1058_s27  ;;  %s1262_s27 = smov 8  }
 0x29a   :  { %vm526_vm11 = vcmp.lt.s32.totalorder %v1405_v61, %v525_v9 }
 0x29b   :  { %v383_v12 = vsel %vm185_vm8, %v382_v11, -inf }
 0x29c   :  { %384 = vmax.xlane.f32.xlu0 %v383_v12 }
 0x2a8   :  { %292 = vrot.lane.b32.xlu2 %v1417_v13, %s1255_s21 }
 0x2b0   :  { %438 = vrot.lane.b32.xlu2 %v1386_v54, %s1256_s23 }
 0x2b8   :  { %529 = vrot.lane.b32.xlu2 %v1423_v14, %s1253_s3 }
 0x2c0   :  { %595 = vrot.lane.b32.xlu2 %v1423_v14, %s1251_s7 }
 0x303   :  { %v282_v15 = vpop.xlane.xlu2 %281 }
 0x304   :  { %v283_v16 = vsub.f32 %v279_v5, %v282_v15  ;;  %v1474_v15 = vsel %vm526_vm11, 0.0, %v1254_v1 }
 0x306   :  { %v284_v17 = vmul.f32 1.442695, %v283_v16 }
 0x308   :  { %1142 = vpow2.f32 %v284_v17 }
 0x30b   :  { %v293_v18 = vpop.permute.xlu2 %292 }
 0x30c   :  { %v298_v19 = vsel %vm231_vm10, %v293_v18, 0 }
 0x30d   :  { %307 = vmatpush.bf16.msrb.mxu1 %v298_v19 }
 0x30e   :  { %v1143_v20 = vpop.eup %1142 }
 0x30f   :  { %v385_v21 = vpop.xlane.xlu0 %384  ;;  %v286_v22 = vsel %vm185_vm8, %v1143_v20, 0.0 }
 0x310   :  { %v386_v23 = vsub.f32 %v382_v11, %v385_v21  ;;  %287 = vadd.xlane.f32.xlu1 %v286_v22 }
 0x312   :  { %v387_v24 = vmul.f32 1.442695, %v386_v23 }
 0x313   :  { %v439_v34 = vpop.permute.xlu2 %438 }
 0x314   :  { %1144 = vpow2.f32 %v387_v24 }
 0x31a   :  { %v1145_v25 = vpop.eup %1144 }
 0x31b   :  { %v389_v26 = vsel %vm185_vm8, %v1145_v25, 0.0  ;;  %v530_v37 = vpop.permute.xlu2 %529 }
 0x31c   :  { %390 = vadd.xlane.f32.xlu0 %v389_v26  ;;  %v249_v26 = vld [vmem:[%s1613_s4] sm:$0xf] }
 0x323   :  { %v596_v43 = vpop.permute.xlu2 %595 }
 0x329   :  { %395 = vrot.lane.b32.xlu1 %v1417_v13, %s1257_s0 }
 0x330   :  { %440 = vrot.lane.b32.xlu0 %v1386_v54, %s1258_s24  ;;  %v1458_v54 = vsel %vm231_vm10, %v314_v53, 0 }
 0x331   :  { %328 = vmatpush.bf16.msrb.mxu3 %v1458_v54 }
 0x335   :  { %431 = vmatpush.bf16.msra.mxu3 %v1465_v56 }
 0x338   :  { %593 = vrot.lane.b32.xlu0 %v1423_v14, %s1252_s19 }
 0x340   :  { %226 = vrot.lane.b32.xlu0 %v1417_v13, %s1246_s22 }
 0x353   :  { %213 = vmax.xlane.f32.xlu1 %v212_v30 }
 0x383   :  { %v288_v31 = vpop.xlane.xlu1 %287 }
 0x384   :  { %1146 = vrcp.f32 %v288_v31 }
 0x38a   :  { %v1147_v32 = vpop.eup %1146 }
 0x38b   :  { %v290_v33 = vmul.f32 %v1147_v32, %v1143_v20 }
 0x38d   :  { %v291_v35 = vpack.c.bf16 %v290_v33, %v290_v33 }
 0x38f   :  { %1047 = vmatmul.msk.bf16.vlgmr.msrb.gmra.mxu1 %vm185_vm8, %v291_v35  ;;  %v391_v36 = vpop.xlane.xlu0 %390 }
 0x390   :  { %1148 = vrcp.f32 %v391_v36 }
 0x396   :  { %v1149_v38 = vpop.eup %1148 }
 0x397   :  { %v393_v39 = vmul.f32 %v1149_v38, %v1145_v25 }
 0x399   :  { %v394_v42 = vpack.c.bf16 %v393_v39, %v393_v39 }
 0x39b   :  { %v396_v40 = vpop.permute.xlu1 %395 }
 0x39c   :  { %v401_v41 = vsel %vm231_vm10, %v396_v40, 0 }
 0x39d   :  { %410 = vmatpush.bf16.msra.mxu1 %v401_v41 }
 0x3a0   :  { %1052 = vmatmul.msk.bf16.vlgmr.msra.gmra.mxu1 %vm185_vm8, %v394_v42 }
 0x3a1   :  { %1059 = vmatpush.xpose.msk.msrb.mxu1 %vm185_vm8, %v530_v37 }
 0x3a2   :  { %v441_v44 = vpop.permute.xlu0 %440 }
 0x3a3   :  { %1054 = vmatpush.xpose.msk.msra.mxu0 %vm185_vm8, %v441_v44 }
 0x3a5   :  { %1062 = vmatpush.xpose.msk.msra.mxu1 %vm185_vm8, %v596_v43 }
 0x3a6   :  { %1055 = vmatmul.msk.f32.vlgmr.msra.gmra.mxu0 %vm185_vm8, %v439_v34 }
 0x3aa   :  { %v594_v45 = vpop.permute.xlu0 %593 }
 0x3b0   :  { %1060 = vmatmul.msk.f32.vlgmr.msrb.gmra.mxu1 %vm185_vm8, %v1423_v14 }
 0x3b2   :  { %v227_v46 = vpop.permute.xlu0 %226 }
 0x3b3   :  { %v233_v47 = vsel %vm231_vm10, %v227_v46, 0 }
 0x3b4   :  { %242 = vmatpush.bf16.msra.mxu2 %v233_v47 }
 0x3b8   :  { %1063 = vmatmul.msk.f32.vlgmr.msra.gmra.mxu1 %vm185_vm8, %v594_v45 }
 0x3c6   :  { %v214_v48 = vpop.xlane.xlu1 %213 }
 0x3c7   :  { %v215_v49 = vsub.f32 %v211_v29, %v214_v48 }
 0x3c9   :  { %v216_v50 = vmul.f32 1.442695, %v215_v49 }
 0x3cb   :  { %1150 = vpow2.f32 %v216_v50 }
 0x3d1   :  { %v1151_v51 = vpop.eup %1150 }
 0x3d2   :  { %v218_v52 = vsel %vm185_vm8, %v1151_v51, 0.0 }
 0x3d3   :  { %219 = vadd.xlane.f32.xlu2 %v218_v52 }
 0x40c   :  { %v309_v57 = vpop.f32.mrf.mxu1 }
 0x40d   :  { %v313_v58 = vpack.c.bf16 %v309_v57, %v309_v57 }
 0x40f   :  { %1048 = vmatmul.msk.bf16.vlgmr.msrb.gmra.mxu3 %vm185_vm8, %v313_v58 }
 0x414   :  { %v311_v59 = vpop.f32.mrf.mxu1 }
 0x41d   :  { %v412_v60 = vpop.f32.mrf.mxu1 }
 0x41e   :  { %v416_v62 = vpack.c.bf16 %v412_v60, %v412_v60 }
 0x420   :  { %1053 = vmatmul.msk.bf16.vlgmr.msra.gmra.mxu3 %vm185_vm8, %v416_v62 }
 0x423   :  { %v463_v63 = vpop.f32.mrf.mxu0 }
 0x424   :  { %v466_v4 = vmul.f32 0.35355338, %v463_v63 }
 0x425   :  { %v414_v5 = vpop.f32.mrf.mxu1 }
 0x426   :  { %v467_v6 = vadd.f32 %v466_v4, %v1409_v3  ;;  %v1480_v3 = vpack.c.bf16 %v1423_v14, %v1423_v14  ;;  %v502_v4 = vld [vmem:[%s1613_s4 + $0xc] sm:$0xf] }
 0x427   :  { %v507_v5 = vsel %vm231_vm10, %v502_v4, 0 }
 0x428   :  { %v468_v7 = vsel %vm185_vm8, %v467_v6, -inf  ;;  %516 = vmatpush.bf16.msrb.mxu0 %v507_v5 }
 0x429   :  { %469 = vmax.xlane.f32.xlu0 %v468_v7 }
 0x42c   :  { %667 = vmatpush.bf16.msra.mxu0 %v1458_v54 }
 0x42d   :  { %v552_v8 = vpop.f32.mrf.mxu1 }
 0x42e   :  { %v555_v34 = vmul.f32 0.35355338, %v552_v8 }
 0x430   :  { %v556_v36 = vadd.f32 %v555_v34, %v1474_v15 }
 0x432   :  { %v557_v37 = vsel %vm185_vm8, %v556_v36, -inf }
 0x435   :  { %v618_v11 = vpop.f32.mrf.mxu1 }
 0x436   :  { %v621_v12 = vmul.f32 0.35355338, %v618_v11 }
 0x438   :  { %v622_v16 = vadd.f32 %v621_v12, %v1474_v15 }
 0x43a   :  { %v623_v17 = vsel %vm185_vm8, %v622_v16, -inf }
 0x43b   :  { %624 = vmax.xlane.f32.xlu1 %v623_v17 }
 0x43d   :  { %635 = vrot.lane.b32.xlu0 %v1480_v3, %s1255_s21 }
 0x445   :  { %691 = vrot.lane.b32.xlu0 %v1423_v14, %s1250_s18 }
 0x446   :  { %v220_v61 = vpop.xlane.xlu2 %219 }
 0x447   :  { %1152 = vrcp.f32 %v220_v61 }
 0x44d   :  { %v1153_v18 = vpop.eup %1152  ;;  %770 = vrot.lane.b32.xlu0 %v1423_v14, %s1256_s23 }
 0x44e   :  { %v222_v1 = vmul.f32 %v1153_v18, %v1151_v51 }
 0x450   :  { %v223_v19 = vpack.c.bf16 %v222_v1, %v222_v1 }
 0x452   :  { %1044 = vmatmul.msk.bf16.vlgmr.msra.gmra.mxu2 %vm185_vm8, %v223_v19 }
 0x454   :  { %480 = vrot.lane.b32.xlu1 %v1417_v13, %s1259_s28  ;;  %v338_v13 = vsel %vm231_vm10, %v249_v26, 0 }
 0x455   :  { %347 = vmatpush.bf16.msrb.mxu2 %v338_v13  ;;  %683 = vmatpush.bf16.msrb.mxu1 %v338_v13 }
 0x45c   :  { %571 = vrot.lane.b32.xlu1 %v1480_v3, %s1246_s22 }
 0x464   :  { %772 = vrot.lane.b32.xlu1 %v1423_v14, %s1258_s24 }
 0x492   :  { %v1495_v20 = vpop.f32.mrf.mxu3 }
 0x49a   :  { %v332_v21 = vpop.f32.mrf.mxu3 }
 0x49c   :  { %v470_v22 = vpop.xlane.xlu0 %469 }
 0x49d   :  { %v471_v23 = vsub.f32 %v467_v6, %v470_v22 }
 0x49f   :  { %v472_v24 = vmul.f32 1.442695, %v471_v23 }
 0x4a1   :  { %1154 = vpow2.f32 %v472_v24 }
 0x4a3   :  { %v1497_v25 = vpop.f32.mrf.mxu3 }
 0x4a7   :  { %v1155_v27 = vpop.eup %1154 }
 0x4a8   :  { %v474_v28 = vsel %vm185_vm8, %v1155_v27, 0.0 }
 0x4a9   :  { %475 = vadd.xlane.f32.xlu2 %v474_v28 }
 0x4ab   :  { %v435_v29 = vpop.f32.mrf.mxu3 }
 0x4ae   :  { %v625_v30 = vpop.xlane.xlu1 %624 }
 0x4af   :  { %v626_v31 = vsub.f32 %v622_v16, %v625_v30  ;;  %v636_v38 = vpop.permute.xlu0 %635 }
 0x4b0   :  { %v641_v46 = vsel %vm231_vm10, %v636_v38, 0 }
 0x4b1   :  { %v627_v32 = vmul.f32 1.442695, %v626_v31 }
 0x4b3   :  { %1156 = vpow2.f32 %v627_v32 }
 0x4b7   :  { %v692_v43 = vpop.permute.xlu0 %691 }
 0x4b9   :  { %v1157_v33 = vpop.eup %1156 }
 0x4ba   :  { %v629_v35 = vsel %vm185_vm8, %v1157_v33, 0.0 }
 0x4bb   :  { %630 = vadd.xlane.f32.xlu2 %v629_v35 }
 0x4bf   :  { %v771_v19 = vpop.permute.xlu0 %770 }
 0x4c3   :  { %558 = vmax.xlane.f32.xlu2 %v557_v37 }
 0x4c6   :  { %v481_v39 = vpop.permute.xlu1 %480 }
 0x4c7   :  { %v486_v40 = vsel %vm231_vm10, %v481_v39, 0 }
 0x4c8   :  { %495 = vmatpush.bf16.msra.mxu2 %v486_v40 }
 0x4ce   :  { %v572_v41 = vpop.permute.xlu1 %571 }
 0x4cf   :  { %v577_v42 = vsel %vm231_vm10, %v572_v41, 0 }
 0x4d0   :  { %586 = vmatpush.bf16.msrb.mxu3 %v577_v42 }
 0x4d4   :  { %1067 = vmatpush.xpose.msk.msra.mxu3 %vm185_vm8, %v692_v43 }
 0x4d5   :  { %v244_v44 = vpop.f32.mrf.mxu2 }
 0x4d6   :  { %v248_v45 = vpack.c.bf16 %v244_v44, %v244_v44  ;;  %v773_v11 = vpop.permute.xlu1 %772 }
 0x4d8   :  { %1049 = vmatmul.msk.bf16.vlgmr.msrb.gmra.mxu2 %vm185_vm8, %v248_v45 }
 0x4d9   :  { %650 = vmatpush.bf16.msrb.mxu2 %v641_v46 }
 0x4dd   :  { %v246_v47 = vpop.f32.mrf.mxu2 }
 0x51c   :  { %v476_v48 = vpop.xlane.xlu2 %475 }
 0x51d   :  { %1158 = vrcp.f32 %v476_v48 }
 0x523   :  { %v1159_v49 = vpop.eup %1158 }
 0x524   :  { %v478_v50 = vmul.f32 %v1159_v49, %v1155_v27 }
 0x526   :  { %v479_v51 = vpack.c.bf16 %v478_v50, %v478_v50 }
 0x528   :  { %1056 = vmatmul.msk.bf16.vlgmr.msra.gmra.mxu2 %vm185_vm8, %v479_v51 }
 0x52e   :  { %v631_v52 = vpop.xlane.xlu2 %630 }
 0x52f   :  { %1160 = vrcp.f32 %v631_v52 }
 0x535   :  { %v1161_v53 = vpop.eup %1160 }
 0x536   :  { %v633_v55 = vmul.f32 %v1161_v53, %v1157_v33  ;;  %v559_v57 = vpop.xlane.xlu2 %558 }
 0x537   :  { %v560_v58 = vsub.f32 %v556_v36, %v559_v57 }
 0x538   :  { %v634_v59 = vpack.c.bf16 %v633_v55, %v633_v55 }
 0x539   :  { %v561_v60 = vmul.f32 1.442695, %v560_v58 }
 0x53a   :  { %1064 = vmatmul.msk.bf16.vlgmr.msrb.gmra.mxu2 %vm185_vm8, %v634_v59 }
 0x53b   :  { %1162 = vpow2.f32 %v561_v60 }
 0x541   :  { %v1163_v62 = vpop.eup %1162 }
 0x542   :  { %v563_v63 = vsel %vm185_vm8, %v1163_v62, 0.0 }
 0x543   :  { %564 = vadd.xlane.f32.xlu2 %v563_v63 }
 0x55b   :  { %v349_v6 = vpop.f32.mrf.mxu2  ;;  %689 = vrot.lane.b32.xlu2 %v1423_v14, %s1249_s6 }
 0x55c   :  { %v350_v22 = vadd.f32 %v349_v6, %v1495_v20 }
 0x55e   :  { %v437_v23 = vadd.f32 %v1497_v25, %v350_v22 }
 0x563   :  { %v351_v7 = vpop.f32.mrf.mxu2 }
 0x5ab   :  { %v497_v8 = vpop.f32.mrf.mxu2 }
 0x5ac   :  { %v501_v9 = vpack.c.bf16 %v497_v8, %v497_v8 }
 0x5ae   :  { %1057 = vmatmul.msk.bf16.vlgmr.msrb.gmra.mxu0 %vm185_vm8, %v501_v9 }
 0x5af   :  { %1071 = vmatpush.xpose.msk.msrb.mxu0 %vm185_vm8, %v773_v11 }
 0x5b3   :  { %v499_v12 = vpop.f32.mrf.mxu2 }
 0x5b6   :  { %v565_v16 = vpop.xlane.xlu2 %564 }
 0x5b7   :  { %1164 = vrcp.f32 %v565_v16 }
 0x5bd   :  { %v1165_v17 = vpop.eup %1164  ;;  %v652_v61 = vpop.f32.mrf.mxu2 }
 0x5be   :  { %v567_v18 = vmul.f32 %v1165_v17, %v1163_v62  ;;  %v656_v1 = vpack.c.bf16 %v652_v61, %v652_v61  ;;  %v690_v21 = vpop.permute.xlu2 %689 }
 0x5c0   :  { %v568_v54 = vpack.c.bf16 %v567_v18, %v567_v18  ;;  %1065 = vmatmul.msk.bf16.vlgmr.msra.gmra.mxu0 %vm185_vm8, %v656_v1 }
 0x5c1   :  { %844 = vmatpush.bf16.msra.mxu0 %v507_v5 }
 0x5c2   :  { %1061 = vmatmul.msk.bf16.vlgmr.msrb.gmra.mxu3 %vm185_vm8, %v568_v54 }
 0x5c3   :  { %763 = vmatpush.bf16.msrb.mxu3 %v1465_v56 }
 0x5c5   :  { %v654_v14 = vpop.f32.mrf.mxu2 }
 0x5d0   :  { %1072 = vmatmul.msk.f32.vlgmr.msrb.gmra.mxu0 %vm185_vm8, %v771_v19 }
 0x5d2   :  { %1068 = vmatmul.msk.f32.vlgmr.msra.gmra.mxu3 %vm185_vm8, %v690_v21 }
 0x62b   :  { %v518_v24 = vpop.f32.mrf.mxu0 }
 0x62c   :  { %v522_v26 = vadd.f32 %v518_v24, %v437_v23 }
 0x633   :  { %v520_v13 = vpop.f32.mrf.mxu0 }
 0x63d   :  { %v1531_v27 = vpop.f32.mrf.mxu0 }
 0x645   :  { %v588_v28 = vpop.f32.mrf.mxu3  ;;  %v671_v29 = vpop.f32.mrf.mxu0 }
 0x646   :  { %v592_v30 = vpack.c.bf16 %v588_v28, %v588_v28 }
 0x648   :  { %1066 = vmatmul.msk.bf16.vlgmr.msrb.gmra.mxu1 %vm185_vm8, %v592_v30 }
 0x64d   :  { %v590_v56 = vpop.f32.mrf.mxu3  ;;  %v795_v31 = vpop.f32.mrf.mxu0 }
 0x64e   :  { %v798_v32 = vmul.f32 0.35355338, %v795_v31 }
 0x650   :  { %v799_v33 = vadd.f32 %v798_v32, %v1474_v15 }
 0x652   :  { %v800_v34 = vsel %vm185_vm8, %v799_v33, -inf }
 0x653   :  { %801 = vmax.xlane.f32.xlu0 %v800_v34 }
 0x655   :  { %v714_v20 = vpop.f32.mrf.mxu3 }
 0x656   :  { %v717_v25 = vmul.f32 0.35355338, %v714_v20  ;;  %v1103_v20 = vld [vmem:[#allocation4] sm:$0xff] }
 0x658   :  { %v718_v35 = vadd.f32 %v717_v25, %v1474_v15  ;;  %v1131_v15 = vld [vmem:[%s1614_s5] ss:$0 sm:$0xff] }
 0x659   :  { %v855_v48 = vadd.f32 %v1131_v15, %v522_v26 }
 0x65a   :  { %v719_v36 = vsel %vm185_vm8, %v718_v35, -inf }
 0x65b   :  { %720 = vmax.xlane.f32.xlu1 %v719_v36  ;;  %v1546_v50 = vadd.f32 %v855_v48, %v1349_v0 }
 0x65d   :  { %v861_v51 = vsel %vm75_vm0, %v1546_v50, 0.0 }
 0x674   :  { %731 = vrot.lane.b32.xlu1 %v1480_v3, %s1257_s0 }
 0x6c5   :  { %v685_v37 = vpop.f32.mrf.mxu1 }
 0x6c6   :  { %v802_v38 = vpop.xlane.xlu0 %801  ;;  %v686_v54 = vadd.f32 %v685_v37, %v1531_v27 }
 0x6c7   :  { %v803_v39 = vsub.f32 %v799_v33, %v802_v38 }
 0x6c9   :  { %v804_v40 = vmul.f32 1.442695, %v803_v39 }
 0x6cb   :  { %1166 = vpow2.f32 %v804_v40 }
 0x6cd   :  { %v687_v41 = vpop.f32.mrf.mxu1 }
 0x6ce   :  { %v721_v42 = vpop.xlane.xlu1 %720 }
 0x6cf   :  { %v722_v43 = vsub.f32 %v718_v35, %v721_v42 }
 0x6d1   :  { %v1167_v44 = vpop.eup %1166  ;;  %v723_v45 = vmul.f32 1.442695, %v722_v43 }
 0x6d2   :  { %v806_v46 = vsel %vm185_vm8, %v1167_v44, 0.0 }
 0x6d3   :  { %1168 = vpow2.f32 %v723_v45  ;;  %807 = vadd.xlane.f32.xlu0 %v806_v46 }
 0x6d9   :  { %v1169_v47 = vpop.eup %1168 }
 0x6da   :  { %v725_v49 = vsel %vm185_vm8, %v1169_v47, 0.0 }
 0x6db   :  { %726 = vadd.xlane.f32.xlu2 %v725_v49 }
 0x6e3   :  { %862 = vadd.xlane.f32.xlu2 %v861_v51  ;;  %v1133_v51 = vld [vmem:[%s1618_s9] ss:$0 sm:$0xff] }
 0x6e6   :  { %v732_v52 = vpop.permute.xlu1 %731 }
 0x6e7   :  { %v737_v53 = vsel %vm231_vm10, %v732_v52, 0  ;;  %812 = vrot.lane.b32.xlu0 %v1480_v3, %s1259_s28 }
 0x6e8   :  { %746 = vmatpush.bf16.msra.mxu2 %v737_v53 }
 0x746   :  { %v808_v55 = vpop.xlane.xlu0 %807 }
 0x747   :  { %1170 = vrcp.f32 %v808_v55 }
 0x74d   :  { %v1171_v58 = vpop.eup %1170 }
 0x74e   :  { %v727_v57 = vpop.xlane.xlu2 %726  ;;  %v810_v63 = vmul.f32 %v1171_v58, %v1167_v44 }
 0x74f   :  { %1172 = vrcp.f32 %v727_v57 }
 0x750   :  { %v811_v8 = vpack.c.bf16 %v810_v63, %v810_v63  ;;  %v1105_v63 = vld [vmem:[%s1621_s12] sm:$0xff] }
 0x755   :  { %v1173_v59 = vpop.eup %1172 }
 0x756   :  { %v729_v60 = vmul.f32 %v1173_v59, %v1169_v47  ;;  %v863_v0 = vpop.xlane.xlu2 %862  ;;  %v1132_v47 = vld [vmem:[%s1617_s8] ss:$0 sm:$0xff] }
 0x757   :  { %v867_v62 = vmul.f32 %v863_v0, %v1360_v10  ;;  %v1107_v0 = vld [vmem:[%s1621_s12 + $0x10] sm:$0xff] }
 0x758   :  { %v730_v4 = vpack.c.bf16 %v729_v60, %v729_v60  ;;  %v1108_v60 = vld [vmem:[%s1621_s12 + $0x18] sm:$0xff] }
 0x759   :  { %v1555_v5 = vsub.f32 %v1546_v50, %v867_v62  ;;  %v813_v6 = vpop.permute.xlu0 %812  ;;  %1000 = vmatpush.bf16.msra.mxu3 %v1108_v60  ;;  %v1106_v62 = vld [vmem:[%s1621_s12 + $0x8] sm:$0xff]  ;;  %s1260_s12 = smov [#allocation7]  }
 0x75a   :  { %v818_v7 = vsel %vm231_vm10, %v813_v6, 0  ;;  %1069 = vmatmul.msk.bf16.vlgmr.msra.gmra.mxu2 %vm185_vm8, %v730_v4 }
 0x75b   :  { %827 = vmatpush.bf16.msra.mxu1 %v818_v7  ;;  %v871_v3 = vmul.f32 %v1555_v5, %v1555_v5 }
 0x75d   :  { %v873_v9 = vsel %vm75_vm0, %v871_v3, 0.0  ;;  %1001 = vmatpush.bf16.msra.mxu3 %v1107_v0 }
 0x75e   :  { %1073 = vmatmul.msk.bf16.vlgmr.msra.gmra.mxu1 %vm185_vm8, %v811_v8  ;;  %874 = vadd.xlane.f32.xlu1 %v873_v9 }
 0x761   :  { %1002 = vmatpush.bf16.msra.mxu3 %v1106_v62 }
 0x765   :  { %1003 = vmatpush.bf16.msra.mxu3 %v1105_v63 }
 0x7d1   :  { %v875_v31 = vpop.xlane.xlu1 %874 }
 0x7d2   :  { %v879_v32 = vmul.f32 %v875_v31, %v1360_v10 }
 0x7d4   :  { %v881_v33 = vadd.f32 1e-06, %v879_v32 }
 0x7d6   :  { %1174 = vrsqrt.f32 %v881_v33  ;;  %vm889_vm13 = vweird.f32 %v881_v33 }
 0x7db   :  { %v829_v11 = vpop.f32.mrf.mxu1 }
 0x7dc   :  { %v833_v12 = vpack.c.bf16 %v829_v11, %v829_v11  ;;  %v1175_v34 = vpop.eup %1174 }
 0x7dd   :  { %v748_v16 = vpop.f32.mrf.mxu2  ;;  %v884_v25 = vmul.f32 %v1175_v34, %v881_v33  ;;  %vm890_vm12 = vweird.f32 %v1175_v34 }
 0x7de   :  { %v752_v17 = vpack.c.bf16 %v748_v16, %v748_v16  ;;  %1074 = vmatmul.msk.bf16.vlgmr.msra.gmra.mxu0 %vm185_vm8, %v833_v12  ;;  %vm891_vm14 = vmor %vm889_vm13, %vm890_vm12  ;;  %v1135_v12 = vld [vmem:[%s1622_s13] ss:$0 sm:$0xff]  ;;  %s1261_s13 = smov 128  }
 0x7df   :  { %v885_v35 = vmul.f32 %v1175_v34, %v884_v25 }
 0x7e0   :  { %1070 = vmatmul.msk.bf16.vlgmr.msrb.gmra.mxu3 %vm185_vm8, %v752_v17 }
 0x7e1   :  { %v886_v39 = vmul.f32 0.5, %v885_v35 }
 0x7e3   :  { %v831_v61 = vpop.f32.mrf.mxu1  ;;  %v887_v40 = vsub.f32 1.5, %v886_v39 }
 0x7e5   :  { %v750_v18 = vpop.f32.mrf.mxu2  ;;  %v888_v42 = vmul.f32 %v1175_v34, %v887_v40 }
 0x7e7   :  { %v892_v45 = vsel %vm891_vm14, %v1175_v34, %v888_v42 }
 0x85b   :  { %v846_v1 = vpop.f32.mrf.mxu0 }
 0x863   :  { %v765_v14 = vpop.f32.mrf.mxu3  ;;  %v848_v19 = vpop.f32.mrf.mxu0 }
 0x864   :  { %v769_v21 = vadd.f32 %v765_v14, %v686_v54 }
 0x866   :  { %v850_v22 = vadd.f32 %v846_v1, %v769_v21 }
 0x868   :  { %v856_v23 = vadd.f32 %v1131_v15, %v850_v22 }
 0x86a   :  { %v1567_v24 = vadd.f32 %v856_v23, %v1356_v2  ;;  %v1104_v2 = vld [vmem:[#allocation4 + $0x8] sm:$0xff] }
 0x86b   :  { %v767_v26 = vpop.f32.mrf.mxu3  ;;  %945 = vmatpush.bf16.msrb.mxu2 %v1104_v2 }
 0x86c   :  { %v864_v13 = vsel %vm75_vm0, %v1567_v24, 0.0 }
 0x86d   :  { %865 = vadd.xlane.f32.xlu2 %v864_v13 }
 0x86f   :  { %946 = vmatpush.bf16.msrb.mxu2 %v1103_v20 }
 0x8e0   :  { %v866_v28 = vpop.xlane.xlu2 %865 }
 0x8e1   :  { %v868_v29 = vmul.f32 %v866_v28, %v1360_v10 }
 0x8e3   :  { %v870_v30 = vsub.f32 %v1567_v24, %v868_v29 }
 0x8e5   :  { %v872_v56 = vmul.f32 %v870_v30, %v870_v30 }
 0x8e7   :  { %v876_v27 = vsel %vm75_vm0, %v872_v56, 0.0 }
 0x8e8   :  { %877 = vadd.xlane.f32.xlu2 %v876_v27 }
 0x95b   :  { %v878_v36 = vpop.xlane.xlu2 %877 }
 0x95c   :  { %v880_v37 = vmul.f32 %v878_v36, %v1360_v10  ;;  %v903_v10 = vmul.f32 %v892_v45, %v1555_v5  ;;  %v1134_v5 = vld [vmem:[%s1620_s11] ss:$0 sm:$0xff]  ;;  %s1018_s11 = sshll.u32 %s1260_s12, 4  ;;  %s1019_s11 = int_to_ptr.vmem [resolvable:$true] %s1018_s11 }
 0x95e   :  { %v882_v38 = vadd.f32 1e-06, %v880_v37  ;;  %v908_v52 = vmul.f32 %v1132_v47, %v903_v10 }
 0x960   :  { %1176 = vrsqrt.f32 %v882_v38  ;;  %vm899_vm1 = vweird.f32 %v882_v38  ;;  %v913_v57 = vadd.f32 %v1133_v51, %v908_v52 }
 0x966   :  { %v1177_v41 = vpop.eup %1176 }
 0x967   :  { %v894_v43 = vmul.f32 %v1177_v41, %v882_v38  ;;  %vm900_vm15 = vweird.f32 %v1177_v41 }
 0x968   :  { %vm901_vm2 = vmor %vm899_vm1, %vm900_vm15 }
 0x969   :  { %v895_v44 = vmul.f32 %v1177_v41, %v894_v43 }
 0x96b   :  { %v896_v46 = vmul.f32 0.5, %v895_v44 }
 0x96d   :  { %v897_v15 = vsub.f32 1.5, %v896_v46 }
 0x96f   :  { %v898_v48 = vmul.f32 %v1177_v41, %v897_v15 }
 0x971   :  { %v902_v49 = vsel %vm901_vm2, %v1177_v41, %v898_v48 }
 0x972   :  { %v904_v53 = vmul.f32 %v902_v49, %v870_v30 }
 0x974   :  { %v909_v55 = vmul.f32 %v1132_v47, %v904_v53 }
 0x976   :  { %v914_v58 = vadd.f32 %v1133_v51, %v909_v55 }
 0x978   :  { %v915_v59 = vpack.c.bf16 %v914_v58, %v913_v57 }
 0x97a   :  { %1083 = vmatmul.msk.bf16.vlgmr.msrb.gmra.mxu2 %vm75_vm0, %v915_v59 }
 0x9fd   :  { %v948_v4 = vpop.f32.mrf.mxu2 }
 0x9fe   :  { %v949_v6 = vadd.f32 %v1134_v5, %v948_v4 }
 0xa00   :  { %v953_v8 = vmax.f32 %v949_v6, 0.0 }
 0xa05   :  { %v950_v7 = vpop.f32.mrf.mxu2 }
 0xa06   :  { %v951_v3 = vadd.f32 %v1134_v5, %v950_v7 }
 0xa08   :  { %v954_v9 = vmax.f32 %v951_v3, 0.0 }
 0xa0a   :  { %v955_v11 = vpack.c.bf16 %v954_v9, %v953_v8 }
 0xa0c   :  { %1100 = vmatmul.msk.bf16.vlgmr.msra.gmra.mxu3 %vm992_vm3, %v955_v11 }
 0xa8f   :  { %v1005_v16 = vpop.f32.mrf.mxu3 }
 0xa90   :  { %v1006_v17 = vadd.f32 %v1135_v12, %v1005_v16 }
 0xa92   :  { %v1010_v61 = vadd.f32 %v1006_v17, %v1546_v50 }
 0xa94   :  { %1012 = vst.msk [vmem:[#allocation7] sm:$0xff] %vm75_vm0, %v1010_v61 }
 0xa97   :  { %v1007_v18 = vpop.f32.mrf.mxu3 }
 0xa98   :  { %v1008_v1 = vadd.f32 %v1135_v12, %v1007_v18 }
 0xa9a   :  { %v1011_v54 = vadd.f32 %v1008_v1, %v1567_v24 }
 0xa9c   :  { %1013 = vst.msk [vmem:[#allocation7 + $0x8] sm:$0xff] %vm75_vm0, %v1011_v54 }
 0xa9d   :  { %1026 = dma.vmem_to_hbm [thread:$0]  %s1019_s11, 256, %s1021_s26, [#allocation6], %s1261_s13, %s1261_s13, %s1262_s27  }
 0xa9e   :  { %1242 = dma.done.wait [#allocation6], 256  }
 0xa9f   :  { %1243 = vsyncadd [#allocation6], 4294967040 }
 0xaa0   :  { %1031 = vsyncpa [#allocation5], 1 }
 0xaa1   :  { %1032 = vsyncpa [#allocation6], 1 }

</bundles_post_ra>
